<compile_context>
chip_gen: v5e
topology: v5e:2x2
jax: 0.10.0
libtpu: 0.0.40
codegen_flags: <defaults>
</compile_context>

<pallas_src>
import jax
import jax.numpy as jnp
from jax import lax
from jax.experimental import pallas as pl
from jax.experimental.pallas import tpu as pltpu


def _svd_po2pl_kernel(packed_ref, oldpm_ref, out_ref):
    f32 = jnp.float32
    BIG = f32(3e38)
    EPS = f32(1e-8)
    Bt = packed_ref.shape[0]
    N = packed_ref.shape[2]

    def body(b, carry):
        p = packed_ref[b]                       # (16, N) channels-first
        oldpm = oldpm_ref[b]                    # (N, 8)  point-major augmented old pts

        src = p[0:3]                            # (3, N)
        flow = p[3:6]                           # (3, N)
        w = p[6:7]                              # (1, N)
        oldnor = p[8:11]                        # (3, N)

        tgt = src + flow                        # (3, N)
        tt = tgt[0:1] * tgt[0:1] + tgt[1:2] * tgt[1:2] + tgt[2:3] * tgt[2:3]  # (1, N)
        ones_row = jnp.ones((1, N), f32)
        zeros3 = jnp.zeros((3, N), f32)
        # Augmented query block rows = [tx,ty,tz,||t||^2,1,0,0,0]; oldpm cols =
        # [-2ox,-2oy,-2oz,1,||o||^2,0,0,0] -> one K=8 MXU matmul gives
        # d[j, i] = ||old_j - tgt_i||^2 directly, old-major (no extra VPU passes).
        tgt_aug = jnp.concatenate([tgt, tt, ones_row, zeros3], axis=0)        # (8, N)
        d = lax.dot_general(oldpm, tgt_aug, (((1,), (0,)), ((), ())),
                            preferred_element_type=f32)                       # (N, N)
        d = jnp.maximum(d, EPS)                 # fused clamp + eps (strictly > 0)

        # ---- fused 3-NN over the old-point (sublane) axis, per query lane.
        # TODO(synk): entries tied with a minimum are all masked/selected, unlike
        # torch three_nn's exact-3 index tie-breaking (degenerate clouds differ).
        d1 = jnp.min(d, axis=0, keepdims=True)                                 # (1, N)
        dm = jnp.where(d <= d1, BIG, d)
        d2 = jnp.min(dm, axis=0, keepdims=True)
        dm = jnp.where(dm <= d2, BIG, dm)
        d3 = jnp.min(dm, axis=0, keepdims=True)

        inv_d = pl.reciprocal(d, approx=True)   # EUP slot (otherwise idle)
        wmat = jnp.where(d <= d3, inv_d, f32(0.0))                             # (N_old, N_q)

        # ---- single gather matmul (natural layout, no NxN transpose):
        # rows 0-2 = sum_k w_k * n_k, row 3 = sum_k w_k.
        # TODO(synk): estimate_normal() source not provided; standard three_nn +
        # inverse-distance normal interpolation implemented (feat2_l0_1 unused).
        gsrc = jnp.concatenate([oldnor, ones_row], axis=0)                     # (4, N)
        res = lax.dot_general(gsrc, wmat, (((1,), (0,)), ((), ())),
                              preferred_element_type=f32)                      # (4, N)
        nor = res[0:3] / res[3:4]               # exact division (only 3N elems)
        nx, ny, nz = nor[0:1], nor[1:2], nor[2:3]
        inv_norm = lax.rsqrt(nx * nx + ny * ny + nz * nz + f32(1e-12))
        nx, ny, nz = nx * inv_norm, ny * inv_norm, nz * inv_norm

        # ---- point-to-plane residual:  y = n.(tgt - src) = n.flow
        y = nx * flow[0:1] + ny * flow[1:2] + nz * flow[2:3]                   # (1, N)

        # ---- Jacobian rows  H = [src x n, n]  (channels-first)
        sx, sy, sz = src[0:1], src[1:2], src[2:3]
        a1 = nz * sy - ny * sz
        a2 = nx * sz - nz * sx
        a3 = ny * sx - nx * sy

        zero_row = jnp.zeros((1, N), f32)
        # Packed (8, N): rows 0-5 = H, row 6 = y, row 7 = 0.
        Hc = jnp.concatenate([a1, a2, a3, nx, ny, nz, y, zero_row], axis=0)    # (8, N)
        Hwc = Hc * w                                                           # diag(w) applied
        # One MXU contraction over K=N: out[:6,:6] = A = H^T W H, out[:6,6] = b.
        out_ref[b] = lax.dot_general(Hwc, Hc, (((1,), (1,)), ((), ())),
                                     preferred_element_type=f32)               # (8, 8)
        return carry

    lax.fori_loop(0, Bt, body, 0)


def euler_to_rotation_matrix(angles):
    # TODO(synk): myspatial.euler_to_rotation_matrix source not provided;
    # assuming R = Rz(c) @ Ry(b) @ Rx(a) with angles = (a, b, c).
    a, b, c = angles[:, 0], angles[:, 1], angles[:, 2]
    ca, sa = jnp.cos(a), jnp.sin(a)
    cb, sb = jnp.cos(b), jnp.sin(b)
    cc, sc = jnp.cos(c), jnp.sin(c)
    one = jnp.ones_like(a)
    zero = jnp.zeros_like(a)
    Rx = jnp.stack([jnp.stack([one, zero, zero], -1),
                    jnp.stack([zero, ca, -sa], -1),
                    jnp.stack([zero, sa, ca], -1)], -2)
    Ry = jnp.stack([jnp.stack([cb, zero, sb], -1),
                    jnp.stack([zero, one, zero], -1),
                    jnp.stack([-sb, zero, cb], -1)], -2)
    Rz = jnp.stack([jnp.stack([cc, -sc, zero], -1),
                    jnp.stack([sc, cc, zero], -1),
                    jnp.stack([zero, zero, one], -1)], -2)
    return jnp.matmul(Rz, jnp.matmul(Ry, Rx))


def _pick_bt(B):
    # Amortize grid/step overhead, but keep >= 2 grid steps when possible so a
    # v7x chip's two TensorCores both get work (no-op on single-TC v5e/v6e).
    for bt in (8, 4, 2):
        if B % bt == 0 and B // bt >= 2:
            return bt
    return 1


def weighted_svd_po2pl(src, oldtgt, feat2_l0_1, flow, weight):
    """src/flow: (B,N,3), oldtgt: (B,N,6), feat2_l0_1: (B,C,N), weight: (B,N,1) or (B,N)."""
    del feat2_l0_1  # TODO(synk): unused, see estimate_normal TODO in the kernel
    B, N, _ = src.shape
    f32 = jnp.float32
    LANE = 128
    Np = ((N + LANE - 1) // LANE) * LANE
    pad = Np - N

    src32 = src.astype(f32)
    flow32 = flow.astype(f32)
    old_xyz = oldtgt[..., :3].astype(f32)
    old_nor = oldtgt[..., 3:6].astype(f32)
    w = weight[..., 0].astype(f32) if weight.ndim == 3 else weight.astype(f32)   # (B, N)

    if pad:
        zpad3 = jnp.zeros((B, pad, 3), f32)
        src32 = jnp.concatenate([src32, zpad3], axis=1)
        flow32 = jnp.concatenate([flow32, zpad3], axis=1)
        old_nor = jnp.concatenate([old_nor, zpad3], axis=1)
        w = jnp.concatenate([w, jnp.zeros((B, pad), f32)], axis=1)   # padded queries: weight 0

    # Channels-first packed block (B, 16, Np):
    # rows 0-2 src | 3-5 flow | 6 weight | 7 pad | 8-10 old normals | 11-15 pad
    src_cf = jnp.transpose(src32, (0, 2, 1))
    flow_cf = jnp.transpose(flow32, (0, 2, 1))
    nor_cf = jnp.transpose(old_nor, (0, 2, 1))
    w_cf = w[:, None, :]
    packed = jnp.concatenate(
        [src_cf, flow_cf, w_cf, jnp.zeros((B, 1, Np), f32), nor_cf,
         jnp.zeros((B, 5, Np), f32)], axis=1)                                   # (B, 16, Np)

    # Point-major augmented old block (B, Np, 8):
    # cols [-2*ox, -2*oy, -2*oz, 1, ||o||^2, 0, 0, 0]; padded old points get a
    # huge squared-norm so they can never appear in any query's top-3.
    oo = jnp.sum(old_xyz * old_xyz, axis=-1, keepdims=True)                      # (B, N, 1)
    oldpm = jnp.concatenate(
        [-2.0 * old_xyz, jnp.ones((B, N, 1), f32), oo, jnp.zeros((B, N, 3), f32)],
        axis=-1)                                                                 # (B, N, 8)
    if pad:
        prow = jnp.concatenate(
            [jnp.zeros((B, pad, 4), f32), jnp.full((B, pad, 1), 3.0e38, f32),
             jnp.zeros((B, pad, 3), f32)], axis=-1)
        oldpm = jnp.concatenate([oldpm, prow], axis=1)                           # (B, Np, 8)

    Bt = _pick_bt(B)

    # VMEM budget: ~5 live (Np,Np) f32 temporaries + double-buffered inputs.
    vmem_est = 5 * Np * Np * 4 + 2 * 2 * Bt * (16 * Np + 8 * Np) * 4 + (2 << 20)
    try:
        cap = int(pltpu.get_tpu_info().vmem_capacity_bytes)
    except Exception:
        cap = 64 << 20   # conservative fallback (v7x per-TensorCore VMEM)
    vmem_limit = int(min(max(int(1.25 * vmem_est), 32 << 20), int(0.8 * cap)))
    # TODO(synk): if 1.25*vmem_est exceeds 0.8*cap, switch to a streamed top-3
    # over oldxyz column chunks instead of the dense O(N^2) path.

    out = pl.pallas_call(
        _svd_po2pl_kernel,
        out_shape=jax.ShapeDtypeStruct((B, 8, 8), f32),
        grid_spec=pltpu.PrefetchScalarGridSpec(
            num_scalar_prefetch=0,
            grid=(B // Bt,),
            in_specs=[pl.BlockSpec((Bt, 16, Np), lambda i: (i, 0, 0)),
                      pl.BlockSpec((Bt, Np, 8), lambda i: (i, 0, 0))],
            out_specs=pl.BlockSpec((Bt, 8, 8), lambda i: (i, 0, 0)),
        ),
        compiler_params=pltpu.CompilerParams(
            dimension_semantics=("parallel",),       # batch steps are independent
            vmem_limit_bytes=vmem_limit,
            allow_input_fusion=[True, True]),        # fuse packing into the prologue
    )(packed, oldpm)

    A = out[:, :6, :6]                                                # (B, 6, 6)
    b = out[:, :6, 6:7]                                               # (B, 6, 1)

    # TODO(synk): torch.pinverse replaced by a regularized solve (identical for
    # well-conditioned normal equations, far cheaper than batched 6x6 SVD on TPU).
    A_reg = A + f32(1e-6) * jnp.eye(6, dtype=f32)[None]
    X = jnp.linalg.solve(A_reg, b)[..., 0]                            # (B, 6)
    R = euler_to_rotation_matrix(X[:, :3])
    t = X[:, 3:]
    return R, t


if __name__ == "__main__":
    key = jax.random.PRNGKey(0)
    B, N, C = 2, 128, 16
    k1, k2, k3, k4, k5, k6 = jax.random.split(key, 6)

    src = jax.random.normal(k1, (B, N, 3), jnp.float32)
    flow = 0.05 * jax.random.normal(k2, (B, N, 3), jnp.float32)
    old_xyz = src + 0.02 * jax.random.normal(k3, (B, N, 3), jnp.float32)
    old_nor = jax.random.normal(k4, (B, N, 3), jnp.float32)
    old_nor = old_nor / jnp.linalg.norm(old_nor, axis=-1, keepdims=True)
    oldtgt = jnp.concatenate([old_xyz, old_nor], axis=-1)             # (B, N, 6)
    feat2_l0_1 = jax.random.normal(k5, (B, C, N), jnp.float32)
    weight = jax.nn.sigmoid(jax.random.normal(k6, (B, N, 1), jnp.float32))

    fn = jax.jit(weighted_svd_po2pl)
    R, t = fn(src, oldtgt, feat2_l0_1, flow, weight)
    jax.block_until_ready((R, t))
    assert R.shape == (B, 3, 3) and t.shape == (B, 3)
    assert bool(jnp.all(jnp.isfinite(R))) and bool(jnp.all(jnp.isfinite(t)))
    print("KERNEL_OK")
</pallas_src>

<mosaic_0001>
module attributes {stable_mosaic.version = 11 : i64} {
  func.func @_svd_po2pl_kernel(%arg0: i32, %arg1: memref<1x16x128xf32, #tpu.memory_space<vmem>>, %arg2: memref<1x128x8xf32, #tpu.memory_space<vmem>>, %arg3: memref<1x8x8xf32, #tpu.memory_space<vmem>>) attributes {dimension_semantics = [#tpu.dimension_semantics<parallel>], iteration_bounds = array<i64: 2>, scalar_prefetch = 0 : i64, scratch_operands = 0 : i64, tpu.core_type = #tpu.core_type<tc>, window_params = [{transform_indices = @transform_0, window_bounds = array<i64: 1, 16, 128>}, {transform_indices = @transform_1, window_bounds = array<i64: 1, 128, 8>}, {transform_indices = @transform_2, window_bounds = array<i64: 1, 8, 8>}]} {
    %cst = arith.constant 9.99999993E-9 : f32
    %cst_0 = arith.constant 3.000000e+38 : f32
    %c0_i32 = arith.constant 0 : i32
    %0 = arith.index_cast %c0_i32 : i32 to index
    %c0 = arith.constant 0 : index
    %c0_1 = arith.constant 0 : index
    %1 = vector.load %arg1[%0, %c0, %c0_1] : memref<1x16x128xf32, #tpu.memory_space<vmem>>, vector<1x16x128xf32>
    %2 = vector.shape_cast %1 : vector<1x16x128xf32> to vector<16x128xf32>
    %3 = arith.index_cast %c0_i32 : i32 to index
    %c0_2 = arith.constant 0 : index
    %c0_3 = arith.constant 0 : index
    %4 = vector.load %arg2[%3, %c0_2, %c0_3] : memref<1x128x8xf32, #tpu.memory_space<vmem>>, vector<1x128x8xf32>
    %5 = vector.shape_cast %4 : vector<1x128x8xf32> to vector<128x8xf32>
    %6 = vector.extract_strided_slice %2 {offsets = [0, 0], sizes = [3, 128], strides = [1, 1]} : vector<16x128xf32> to vector<3x128xf32>
    %7 = vector.extract_strided_slice %2 {offsets = [3, 0], sizes = [3, 128], strides = [1, 1]} : vector<16x128xf32> to vector<3x128xf32>
    %8 = vector.extract_strided_slice %2 {offsets = [6, 0], sizes = [1, 128], strides = [1, 1]} : vector<16x128xf32> to vector<1x128xf32>
    %9 = vector.extract_strided_slice %2 {offsets = [8, 0], sizes = [3, 128], strides = [1, 1]} : vector<16x128xf32> to vector<3x128xf32>
    %10 = arith.addf %6, %7 : vector<3x128xf32>
    %11 = vector.extract_strided_slice %10 {offsets = [0, 0], sizes = [1, 128], strides = [1, 1]} : vector<3x128xf32> to vector<1x128xf32>
    %12 = vector.extract_strided_slice %10 {offsets = [0, 0], sizes = [1, 128], strides = [1, 1]} : vector<3x128xf32> to vector<1x128xf32>
    %13 = arith.mulf %11, %12 : vector<1x128xf32>
    %14 = vector.extract_strided_slice %10 {offsets = [1, 0], sizes = [1, 128], strides = [1, 1]} : vector<3x128xf32> to vector<1x128xf32>
    %15 = vector.extract_strided_slice %10 {offsets = [1, 0], sizes = [1, 128], strides = [1, 1]} : vector<3x128xf32> to vector<1x128xf32>
    %16 = arith.mulf %14, %15 : vector<1x128xf32>
    %17 = arith.addf %13, %16 : vector<1x128xf32>
    %18 = vector.extract_strided_slice %10 {offsets = [2, 0], sizes = [1, 128], strides = [1, 1]} : vector<3x128xf32> to vector<1x128xf32>
    %19 = vector.extract_strided_slice %10 {offsets = [2, 0], sizes = [1, 128], strides = [1, 1]} : vector<3x128xf32> to vector<1x128xf32>
    %20 = arith.mulf %18, %19 : vector<1x128xf32>
    %21 = arith.addf %17, %20 : vector<1x128xf32>
    %cst_4 = arith.constant 1.000000e+00 : f32
    %22 = vector.broadcast %cst_4 : f32 to vector<1x128xf32>
    %cst_5 = arith.constant 0.000000e+00 : f32
    %23 = vector.broadcast %cst_5 : f32 to vector<3x128xf32>
    %24 = tpu.concatenate %10, %21, %22, %23 in 0 : vector<3x128xf32>, vector<1x128xf32>, vector<1x128xf32>, vector<3x128xf32> -> vector<8x128xf32>
    %cst_6 = arith.constant dense<0.000000e+00> : vector<128x128xf32>
    %25 = tpu.matmul %5, %24, %cst_6 {dimension_numbers = #tpu.dot_dimension_numbers<[1], [0], [0], [1], [0, 0, 1, 1], [], []>} : vector<128x8xf32>, vector<8x128xf32>, vector<128x128xf32> -> vector<128x128xf32>
    %26 = vector.broadcast %cst : f32 to vector<128x128xf32>
    %27 = arith.maximumf %25, %26 : vector<128x128xf32>
    %cst_7 = arith.constant dense<0x7F800000> : vector<128xf32>
    %28 = vector.multi_reduction <minimumf>, %27, %cst_7 [0] : vector<128x128xf32> to vector<128xf32>
    %29 = vector.shape_cast %28 : vector<128xf32> to vector<1x128xf32>
    %30 = vector.broadcast %29 : vector<1x128xf32> to vector<128x128xf32>
    %31 = arith.cmpf ole, %27, %30 : vector<128x128xf32>
    %32 = vector.broadcast %cst_0 : f32 to vector<128x128xf32>
    %33 = arith.select %31, %32, %27 : vector<128x128xi1>, vector<128x128xf32>
    %cst_8 = arith.constant dense<0x7F800000> : vector<128xf32>
    %34 = vector.multi_reduction <minimumf>, %33, %cst_8 [0] : vector<128x128xf32> to vector<128xf32>
    %35 = vector.shape_cast %34 : vector<128xf32> to vector<1x128xf32>
    %36 = vector.broadcast %35 : vector<1x128xf32> to vector<128x128xf32>
    %37 = arith.cmpf ole, %33, %36 : vector<128x128xf32>
    %38 = vector.broadcast %cst_0 : f32 to vector<128x128xf32>
    %39 = arith.select %37, %38, %33 : vector<128x128xi1>, vector<128x128xf32>
    %cst_9 = arith.constant dense<0x7F800000> : vector<128xf32>
    %40 = vector.multi_reduction <minimumf>, %39, %cst_9 [0] : vector<128x128xf32> to vector<128xf32>
    %41 = vector.shape_cast %40 : vector<128xf32> to vector<1x128xf32>
    %42 = tpu.reciprocal %27 {approx = true} : vector<128x128xf32> -> vector<128x128xf32>
    %43 = vector.broadcast %41 : vector<1x128xf32> to vector<128x128xf32>
    %44 = arith.cmpf ole, %27, %43 : vector<128x128xf32>
    %cst_10 = arith.constant 0.000000e+00 : f32
    %45 = vector.broadcast %cst_10 : f32 to vector<128x128xf32>
    %46 = arith.select %44, %42, %45 : vector<128x128xi1>, vector<128x128xf32>
    %47 = tpu.concatenate %9, %22 in 0 : vector<3x128xf32>, vector<1x128xf32> -> vector<4x128xf32>
    %cst_11 = arith.constant dense<0.000000e+00> : vector<4x128xf32>
    %48 = tpu.matmul %47, %46, %cst_11 {dimension_numbers = #tpu.dot_dimension_numbers<[1], [0], [0], [1], [0, 0, 1, 1], [], []>} : vector<4x128xf32>, vector<128x128xf32>, vector<4x128xf32> -> vector<4x128xf32>
    %49 = vector.extract_strided_slice %48 {offsets = [0, 0], sizes = [3, 128], strides = [1, 1]} : vector<4x128xf32> to vector<3x128xf32>
    %50 = vector.extract_strided_slice %48 {offsets = [3, 0], sizes = [1, 128], strides = [1, 1]} : vector<4x128xf32> to vector<1x128xf32>
    %51 = vector.broadcast %50 : vector<1x128xf32> to vector<3x128xf32>
    %52 = arith.divf %49, %51 : vector<3x128xf32>
    %53 = vector.extract_strided_slice %52 {offsets = [0, 0], sizes = [1, 128], strides = [1, 1]} : vector<3x128xf32> to vector<1x128xf32>
    %54 = vector.extract_strided_slice %52 {offsets = [1, 0], sizes = [1, 128], strides = [1, 1]} : vector<3x128xf32> to vector<1x128xf32>
    %55 = vector.extract_strided_slice %52 {offsets = [2, 0], sizes = [1, 128], strides = [1, 1]} : vector<3x128xf32> to vector<1x128xf32>
    %56 = arith.mulf %53, %53 : vector<1x128xf32>
    %57 = arith.mulf %54, %54 : vector<1x128xf32>
    %58 = arith.addf %56, %57 : vector<1x128xf32>
    %59 = arith.mulf %55, %55 : vector<1x128xf32>
    %60 = arith.addf %58, %59 : vector<1x128xf32>
    %cst_12 = arith.constant 9.99999996E-13 : f32
    %61 = vector.broadcast %cst_12 : f32 to vector<1x128xf32>
    %62 = arith.addf %60, %61 : vector<1x128xf32>
    %63 = math.rsqrt %62 : vector<1x128xf32>
    %64 = arith.mulf %53, %63 : vector<1x128xf32>
    %65 = arith.mulf %54, %63 : vector<1x128xf32>
    %66 = arith.mulf %55, %63 : vector<1x128xf32>
    %67 = vector.extract_strided_slice %7 {offsets = [0, 0], sizes = [1, 128], strides = [1, 1]} : vector<3x128xf32> to vector<1x128xf32>
    %68 = arith.mulf %64, %67 : vector<1x128xf32>
    %69 = vector.extract_strided_slice %7 {offsets = [1, 0], sizes = [1, 128], strides = [1, 1]} : vector<3x128xf32> to vector<1x128xf32>
    %70 = arith.mulf %65, %69 : vector<1x128xf32>
    %71 = arith.addf %68, %70 : vector<1x128xf32>
    %72 = vector.extract_strided_slice %7 {offsets = [2, 0], sizes = [1, 128], strides = [1, 1]} : vector<3x128xf32> to vector<1x128xf32>
    %73 = arith.mulf %66, %72 : vector<1x128xf32>
    %74 = arith.addf %71, %73 : vector<1x128xf32>
    %75 = vector.extract_strided_slice %6 {offsets = [0, 0], sizes = [1, 128], strides = [1, 1]} : vector<3x128xf32> to vector<1x128xf32>
    %76 = vector.extract_strided_slice %6 {offsets = [1, 0], sizes = [1, 128], strides = [1, 1]} : vector<3x128xf32> to vector<1x128xf32>
    %77 = vector.extract_strided_slice %6 {offsets = [2, 0], sizes = [1, 128], strides = [1, 1]} : vector<3x128xf32> to vector<1x128xf32>
    %78 = arith.mulf %66, %76 : vector<1x128xf32>
    %79 = arith.mulf %65, %77 : vector<1x128xf32>
    %80 = arith.subf %78, %79 : vector<1x128xf32>
    %81 = arith.mulf %64, %77 : vector<1x128xf32>
    %82 = arith.mulf %66, %75 : vector<1x128xf32>
    %83 = arith.subf %81, %82 : vector<1x128xf32>
    %84 = arith.mulf %65, %75 : vector<1x128xf32>
    %85 = arith.mulf %64, %76 : vector<1x128xf32>
    %86 = arith.subf %84, %85 : vector<1x128xf32>
    %cst_13 = arith.constant 0.000000e+00 : f32
    %87 = vector.broadcast %cst_13 : f32 to vector<1x128xf32>
    %88 = tpu.concatenate %80, %83, %86, %64, %65, %66, %74, %87 in 0 : vector<1x128xf32>, vector<1x128xf32>, vector<1x128xf32>, vector<1x128xf32>, vector<1x128xf32>, vector<1x128xf32>, vector<1x128xf32>, vector<1x128xf32> -> vector<8x128xf32>
    %89 = vector.broadcast %8 : vector<1x128xf32> to vector<8x128xf32>
    %90 = arith.mulf %88, %89 : vector<8x128xf32>
    %cst_14 = arith.constant dense<0.000000e+00> : vector<8x8xf32>
    %91 = tpu.matmul %90, %88, %cst_14 {dimension_numbers = #tpu.dot_dimension_numbers<[1], [1], [0], [0], [0, 0, 1, 0], [], []>} : vector<8x128xf32>, vector<8x128xf32>, vector<8x8xf32> -> vector<8x8xf32>
    %92 = arith.index_cast %c0_i32 : i32 to index
    %c0_15 = arith.constant 0 : index
    %c0_16 = arith.constant 0 : index
    %93 = vector.load %arg3[%92, %c0_15, %c0_16] : memref<1x8x8xf32, #tpu.memory_space<vmem>>, vector<1x8x8xf32>
    %94 = vector.shape_cast %93 : vector<1x8x8xf32> to vector<8x8xf32>
    %95 = vector.shape_cast %91 : vector<8x8xf32> to vector<1x8x8xf32>
    tpu.vector_store %arg3[%92, %c0_15, %c0_16], %95 {strides = array<i32>} : memref<1x8x8xf32, #tpu.memory_space<vmem>>, vector<1x8x8xf32>,
    %c1_i32 = arith.constant 1 : i32
    return
  }
  func.func @transform_0(%arg0: i32) -> (i32, i32, i32) {
    %c0_i32 = arith.constant 0 : i32
    %c0_i32_0 = arith.constant 0 : i32
    %c0_i32_1 = arith.constant 0 : i32
    return %arg0, %c0_i32, %c0_i32_0 : i32, i32, i32
  }
  func.func @transform_1(%arg0: i32) -> (i32, i32, i32) {
    %c0_i32 = arith.constant 0 : i32
    %c0_i32_0 = arith.constant 0 : i32
    %c0_i32_1 = arith.constant 0 : i32
    return %arg0, %c0_i32, %c0_i32_0 : i32, i32, i32
  }
  func.func @transform_2(%arg0: i32) -> (i32, i32, i32) {
    %c0_i32 = arith.constant 0 : i32
    %c0_i32_0 = arith.constant 0 : i32
    %c0_i32_1 = arith.constant 0 : i32
    return %arg0, %c0_i32, %c0_i32_0 : i32, i32, i32
  }
}

</mosaic_0001>

<bundles_post_ra>
// kernel: custom-call.8
= control target key start
LH: loop header
LB: loop body
LE: loop exit
PB: predicated region body
PF: predicated region fallthrough
CT: control target
= control target key end

     0   :  { %5 = vsyncpa [#allocation4], 0  ;;  %s902_s0 = inlined_call_operand.vmem [shape: f32[2,6,6], index: 0, kind: input, shape index: {}]   ;;  %s903_s1 = inlined_call_operand.vmem [shape: f32[2,6,6], index: 1, kind: output, shape index: {0}]   ;;  %s904_s2 = inlined_call_operand.hbm [shape: s32[2,6], index: 2, kind: output, shape index: {1}]   ;;  %s905_s3 = inlined_call_operand.vmem [shape: s32[2,6], index: 3, kind: output, shape index: {2}]  }
   0x1   :  { %7 = vsyncpa [#allocation4 + $0x1], 0  ;;  %s725_s12 = smov 0   ;;  %s727_s13 = smov 0  }
   0x2   :  { %s729_s14 = smov 0   ;;  %s731_s15 = smov 0  }
   0x3 LB: > { %s746_s16 = sadd.s32 4294967295, %s698_s15   ;;  %s561_s17 = sadd.s32 4294967294, %s698_s15   ;;  %s698_s15 = sphi %s731_s15, %s911_s15   ;;  %s694_s14 = sphi %s729_s14, %s910_s14   ;;  %s690_s13 = sphi %s727_s13, %s909_s13   ;;  %s686_s12 = sphi %s725_s12, %s908_s12  }
   0x4   : > { %s750_s18 = sadd.s32 1, %s698_s15   ;;  %s17_s19 = sshrl.u32 %s698_s15, 3 }
   0x5   : > { %s18_s20 = sshrl.u32 %s750_s18, 3  ;;  %s22_s21 = sadd.s32 1, %s694_s14 }
   0x6   : > { %s19_s22 = ssub.s32 %s17_s19, %s18_s20  ;;  %p32_p0 = scmp.ne.s32.totalorder %s694_s14, %s690_s13 }
   0x7   : > { %p20_p1 = scmp.eq.s32.totalorder %s19_s22, 0  ;;  %p33_p2 = scmp.eq.s32.totalorder %s746_s16, 1 }
   0x8   : > { %p38_p3 = scmp.ne.s32.totalorder %s690_s13, %s686_s12  ;;  %p39_p4 = scmp.eq.s32.totalorder %s561_s17, 1 }
   0x9   : > { %s761_s23 = scalar_select %p20_p1, %s694_s14, %s22_s21  }
   0xa   : > { %p763_p5 = por %p33_p2, %p32_p0  ;;  %p767_p6 = por %p39_p4, %p38_p3 }
   0xb   : > { %p563_p7 = scmp.ge.s32.totalorder %s698_s15, 2 }
   0xc   : > { %s85_s26 = sand.u32 (!%p563_p7), 1, %s698_s15   ;;  %s565_s27 = sshll.u32 (!%p563_p7), %s698_s15, 3 }
   0xd   : > { %83 = sbr.rel (%p563_p7) target bundleno = 20 (0x14), region = 16  ;;  %s564_s28 = sshll.u32 (!%p563_p7), %s85_s26, 3 }
   0xe   : > { %s89_s4 = scalar_lea.vmem (!%p563_p7), %s902_s0, %s565_s27  ;;  %s87_s5 = scalar_lea.vmem (!%p563_p7), [#allocation0], %s564_s28 }
  0x12   : > { %v118_v0 = vld [vmem:[%s89_s4] sm:$0xff] }
  0x13   : > { %119 = vst [vmem:[%s87_s5] sm:$0xff] %v118_v0 }
  0x14 PF: > { %p566_p8 = scmp.ge.s32.totalorder %s698_s15, 1  ;;  %p124_p9 = scmp.lt.s32.totalorder %s698_s15, 3 }
  0x16   : > { %p125_p10 = pnand %p566_p8, %p124_p9 }
  0x18   : > { %128 = sbr.rel (%p125_p10) target bundleno = 476 (0x1dc), region = 54 }
  0x1d   : > { %s131_s6 = sand.u32 1, %s746_s16   ;;  %s146_s7 = sand.u32 1, %s690_s13   ;;  %v164_v1 = vlaneseq  ;;  %v704_v4 = vmov 0  }
  0x1e   : > { %s567_s8 = sshll.u32 %s131_s6, 3  ;;  %s785_s9 = sshll.u32 %s146_s7, 1 }
  0x1f   : > { %v788_v2 = vshrl.u32 %v164_v1, 7  ;;  %s133_s10 = scalar_lea.vmem [#allocation0], %s567_s8  ;;  %s790_s11 = scalar_lea.vmem [#allocation1], %s567_s8 }
  0x20   : > { %v157_v3 = vld [vmem:[%s133_s10] sm:$0xff]  ;;  %s159_s17 = sand.u32 7, %s746_s16   ;;  %s148_s20 = scalar_lea.vmem [#allocation3], %s785_s9 }
  0x21   : > { %158 = vst [vmem:[%s790_s11] sm:$0xff] %v157_v3  ;;  %s795_s19 = scalar_lea.vmem [#allocation2], %s159_s17  ;;  %s154_s21 = scalar_lea.vmem [#allocation6], %s785_s9 }
  0x22   : > { %168 = vst [vmem:[#allocation7] sm:$0xff] %v788_v2  ;;  %s800_s22 = scalar_lea.vmem [#allocation5], %s159_s17  ;;  %s802_s26 = smov 0  }
  0x23   : > { %163 = vst [vmem:[%s795_s19] sm:$0x1] %v704_v4 }
  0x24 LB: >> { %vm184_vm0 = vcmp.lt.s32.totalorder %v788_v2, 6  ;;  %v810_v7 = vstv %s702_s26  ;;  %s225_s27 = ssub.s32 128, %s702_s26  ;;  %s237_s28 = scalar_lea.vmem %s790_s11, %s702_s26 [#allocation1]  ;;  %v231_v38 = vand.u32 127, %v164_v1  ;;  %s702_s26 = sphi %s802_s26, %s174_s26  }
  0x25   : >> { %vm183_vm1 = vcmp.ge.s32.totalorder %v788_v2, %v810_v7  ;;  %s243_s4 = scalar_lea.vmem [#allocation7], %s702_s26  ;;  %vm263_vm14 = vcmp.gt.s32.totalorder %v788_v2, %v810_v7  ;;  %s174_s26 = sadd.s32 1, %s702_s26  }
  0x26   : >> { %vm185_vm3 = vmand %vm183_vm1, %vm184_vm0  ;;  %vm232_vm12 = vcmp.eq.s32.totalorder %v231_v38, %v810_v7  ;;  %p171_p11 = scmp.ge.s32.totalorder %s174_s26, 6  }
  0x27   : > { %s399_s6 = sshrl.u32 (%p171_p11), %s746_s16, 3  ;;  %s405_s26 = sshll.u32 (%p171_p11), %s148_s20, 4  ;;  %s406_s26 = int_to_ptr.vmem [resolvable:$true] %s405_s26 }
  0x28   : >> { %v179_v5 = vld [vmem:[%s790_s11] sm:$0xff]  ;;  %v239_v39 = vld [vmem:[%s237_s28] ss:$0 sm:$0xff]  ;;  %s846_s8 = sshll.u32 (%p171_p11), %s399_s6, 1 }
  0x29   : >> { %v180_v6 = vand.u32 2147483647, %v179_v5  ;;  %v245_v43 = vld [vmem:[%s243_s4] ss:$0 sm:$0xff] }
  0x2a   : >> { %v234_v41 = vld [vmem:[%s795_s19] ss:$0 sm:$0xff] }
  0x2b   : >> { %vm571_vm2 = vcmp.gt.f32.partialorder %v180_v6, -inf }
  0x2c   : >> { %vm187_vm4 = vmand %vm185_vm3, %vm571_vm2 }
  0x2d   : >> { %v188_v8 = vsel %vm187_vm4, %v788_v2, %v810_v7  ;;  %v189_v9 = vsel %vm187_vm4, %v180_v6, -inf  ;;  %vm280_vm4 = vmand %vm263_vm14, %vm232_vm12 }
  0x2e   : >> { %v190_v10 = vrot.slane %v189_v9, 1  ;;  %v191_v11 = vrot.slane %v188_v8, 1 }
  0x30   : >> { %vm192_vm5 = vcmp.ge.f32.partialorder %v190_v10, %v189_v9  ;;  %v195_v12 = vrot.slane %v190_v10, 1  ;;  %v196_v13 = vrot.slane %v191_v11, 1 }
  0x31   : >> { %v193_v14 = vsel %vm192_vm5, %v190_v10, %v189_v9  ;;  %v194_v15 = vsel %vm192_vm5, %v191_v11, %v188_v8  ;;  %vm255_vm5 = vcmp.gt.s32.totalorder %v231_v38, %v810_v7 }
  0x32   : >> { %vm197_vm6 = vcmp.ge.f32.partialorder %v195_v12, %v193_v14  ;;  %v200_v16 = vrot.slane %v195_v12, 1  ;;  %v201_v17 = vrot.slane %v196_v13, 1 }
  0x33   : >> { %v198_v18 = vsel %vm197_vm6, %v195_v12, %v193_v14  ;;  %v199_v19 = vsel %vm197_vm6, %v196_v13, %v194_v15 }
  0x34   : >> { %vm202_vm7 = vcmp.ge.f32.partialorder %v200_v16, %v198_v18  ;;  %v205_v20 = vrot.slane %v200_v16, 1  ;;  %v206_v21 = vrot.slane %v201_v17, 1 }
  0x35   : >> { %v203_v22 = vsel %vm202_vm7, %v200_v16, %v198_v18  ;;  %v204_v23 = vsel %vm202_vm7, %v201_v17, %v199_v19 }
  0x36   : >> { %vm207_vm8 = vcmp.ge.f32.partialorder %v205_v20, %v203_v22  ;;  %v210_v24 = vrot.slane %v205_v20, 1  ;;  %v211_v25 = vrot.slane %v206_v21, 1 }
  0x37   : >> { %v208_v26 = vsel %vm207_vm8, %v205_v20, %v203_v22  ;;  %v209_v27 = vsel %vm207_vm8, %v206_v21, %v204_v23 }
  0x38   : >> { %vm212_vm9 = vcmp.ge.f32.partialorder %v210_v24, %v208_v26  ;;  %v215_v28 = vrot.slane %v210_v24, 1  ;;  %v216_v29 = vrot.slane %v211_v25, 1 }
  0x39   : >> { %v213_v30 = vsel %vm212_vm9, %v210_v24, %v208_v26  ;;  %v214_v31 = vsel %vm212_vm9, %v211_v25, %v209_v27 }
  0x3a   : >> { %vm217_vm10 = vcmp.ge.f32.partialorder %v215_v28, %v213_v30  ;;  %v220_v32 = vrot.slane %v215_v28, 1  ;;  %v221_v33 = vrot.slane %v216_v29, 1 }
  0x3b   : >> { %v218_v34 = vsel %vm217_vm10, %v215_v28, %v213_v30  ;;  %v219_v35 = vsel %vm217_vm10, %v216_v29, %v214_v31 }
  0x3c   : >> { %vm222_vm11 = vcmp.ge.f32.partialorder %v220_v32, %v218_v34 }
  0x3d   : >> { %v224_v36 = vsel %vm222_vm11, %v221_v33, %v219_v35 }
  0x3e   : >> { %226 = vrot.lane.b32.xlu0 %v224_v36, %s225_s27  ;;  %s403_s27 = scalar_lea.hbm (%p171_p11), %s904_s2, %s846_s8 }
  0xb0   : >> { %v227_v37 = vpop.permute.xlu0 %226 }
  0xb1   : >> { %580 = vpush %v227_v37 }
  0xe2   : >> { %s581_s29 = spop %580 }
  0xe3   : >> { %v233_v40 = vstv %s581_s29  ;;  %s238_s30 = scalar_lea.vmem %s790_s11, %s581_s29 [#allocation1]  ;;  %s244_s5 = scalar_lea.vmem [#allocation7], %s581_s29 }
  0xe4   : >> { %v240_v42 = vld [vmem:[%s238_s30] ss:$0 sm:$0xff]  ;;  %v235_v45 = vsel %vm232_vm12, %v233_v40, %v234_v41 }
  0xe5   : >> { %v246_v44 = vld [vmem:[%s244_s5] ss:$0 sm:$0xff]  ;;  %241 = vst [vmem:[%s238_s30] sm:$0x1] %v239_v39  ;;  %vm249_vm13 = vcmp.ne.f32.partialorder %v240_v42, 0.0  ;;  %v256_v61 = vsel %vm255_vm5, %v240_v42, 0.0 }
  0xe6   : >> { %242 = vst [vmem:[%s237_s28] sm:$0x1] %v240_v42  ;;  %vm250_vm15 = vmand %vm232_vm12, %vm249_vm13  ;;  %s575_s28 = sshll.u32 (%p171_p11), %s746_s16, 3 }
  0xe7   : >> { %247 = vst [vmem:[%s244_s5] sm:$0x1] %v245_v43  ;;  %v251_v46 = vsel %vm250_vm15, %v240_v42, 1.0  ;;  %s353_s5 = scalar_lea.sflag (%p171_p11), [#allocation4], %s146_s7 }
  0xe8   : >> { %248 = vst [vmem:[%s243_s4] sm:$0x1] %v246_v44  ;;  %v264_v47 = vsel %vm263_vm14, %v251_v46, 1.0  ;;  %s362_s4 = scalar_lea.vmem (%p171_p11), %s903_s1, %s575_s28 }
  0xe9   : >> { %630 = vrcp.f32 %v264_v47  ;;  %236 = vst [vmem:[%s795_s19] sm:$0x1] %v235_v45  ;;  %v276_v51 = vand.u32 2147483648, %v264_v47  ;;  %v274_v53 = vand.u32 2147483647, %v264_v47  ;;  %vm270_vm1 = vweird.f32 %v264_v47  ;;  %s407_s19 = sshll.u32 (%p171_p11), %s403_s27, 4  ;;  %s652_s27 = scalar_lea.hbm (%p171_p11), %s904_s2, 2  ;;  %s408_s19 = int_to_ptr.hbm [resolvable:$true] %s407_s19 }
  0xea   : > { %s646_s6 = sshra.s32 (%p171_p11), %s408_s19, 4  ;;  %s647_s6 = int_to_ptr.hbm [resolvable:$true] %s646_s6 }
  0xeb   : >> { %v277_v55 = vor.u32 1.1754944e-38, %v276_v51  ;;  %vm275_vm3 = vcmp.eq.f32.partialorder %v274_v53, 8.507059e+37  ;;  %s648_s10 = scalar_lea.hbm (%p171_p11), %s647_s6, 2  ;;  %p653_p1 = scmp.lt.s32.totalorder (%p171_p11), %s647_s6, %s904_s2 }
  0xec   : > { %p649_p12 = scmp.ne.s32.totalorder (%p171_p11), %s647_s6, %s648_s10  ;;  %p654_p2 = scmp.lt.s32.totalorder (%p171_p11), %s652_s27, %s648_s10 }
  0xed   : >> { %v260_v57 = vld [vmem:[%s790_s11] sm:$0xff] }
  0xee   : > { %p650_p13 = pnand (%p171_p11), %p649_p12, %p763_p5  ;;  %p655_p3 = por (%p171_p11), %p654_p2, %p653_p1 }
  0xef   : >> { %v631_v48 = vpop.eup %630  ;;  %v287_v3 = vld [vmem:[#allocation7] sm:$0xff] (%p171_p11) }
  0xf0   : >> { %v266_v49 = vmul.f32 %v631_v48, %v264_v47  ;;  %vm271_vm0 = vweird.f32 %v631_v48  ;;  %v338_v1 = vld [vmem:[#allocation2] sm:$0x3] (%p171_p11)  ;;  %p651_p0 = pneg (%p171_p11), %p650_p13 }
  0xf1   : >> { %vm272_vm2 = vmor %vm270_vm1, %vm271_vm0  ;;  %341 = vst [vmem:[%s148_s20] sm:$0x3] (%p171_p11), %v338_v1 }
  0xf2   : >> { %v267_v50 = vsub.f32 1.0, %v266_v49  ;;  %p656_p4 = pnand (%p171_p11), %p655_p3, %p651_p0 }
  0xf4   : >> { %v268_v52 = vmul.f32 %v631_v48, %v267_v50 }
  0xf6   : >> { %v269_v54 = vadd.f32 %v631_v48, %v268_v52 }
  0xf8   : >> { %v273_v56 = vsel %vm272_vm2, %v631_v48, %v269_v54 }
  0xf9   : >> { %v278_v58 = vsel %vm275_vm3, %v277_v55, %v273_v56 }
  0xfa   : >> { %v279_v59 = vmul.f32 %v278_v58, %v260_v57 }
  0xfc   : >> { %v281_v60 = vsel %vm280_vm4, %v279_v59, 0.0 }
  0xfd   : >> { %282 = vadd.xlane.f32.xlu0 %v281_v60 }
 0x126   : > { %303 = vxpose.xlu0.b32.start.end [1/1] (short) (narrow) (%p171_p11), %v287_v3, 8 }
 0x170   : >> { %v283_v62 = vpop.xlane.xlu0 %282 }
 0x171   : >> { %v284_v63 = vmul.f32 %v283_v62, %v256_v61  ;;  %173 = sbr.rel (!%p171_p11) target bundleno = 36 (0x24), region = 210 }
 0x173   : >> { %v285_v0 = vsub.f32 %v279_v59, %v284_v63 }
 0x175   : >> { %286 = vst [vmem:[%s790_s11] sm:$0xff] %v285_v0 }
 0x17c   : > { %v391_v2 = vld [vmem:[%s790_s11] sm:$0xff] }
 0x17d   : > { %392 = vst [vmem:[%s362_s4] sm:$0xff] %v391_v2 }
 0x17e   : > { %659 = shalt.err (!%p656_p4)
}
 0x17f   : > { %582 = dma.vmem_to_hbm [thread:$0]  (%p763_p5), %s406_s26, 32, %s408_s19, %s353_s5  }
 0x180   : > { %s416_s20 = scalar_lea.vmem (%p763_p5), %s905_s3, %s846_s8 }
 0x1ca   : > { %v319_v4 = vpop.trf.xlu0 }
 0x1cb   : > { %335 = vst [vmem:[%s800_s22] sm:$0x1] %v319_v4 }
 0x1cf   : > { %413 = sbr.rel (!%p763_p5) target bundleno = 476 (0x1dc), region = 104 }
 0x1d2   : > { %v344_v5 = vld [vmem:[#allocation5] sm:$0x3] }
 0x1d3   : > { %347 = vst [vmem:[%s154_s21] sm:$0x3] %v344_v5 }
 0x1da   : > { %v433_v6 = vld [vmem:[%s154_s21] sm:$0x3] }
 0x1db   : > { %434 = vst [vmem:[%s416_s20] sm:$0x3] %v433_v6 }
 0x1dc PF: > { %s462_s22 = sand.u32 1, %s686_s12   ;;  %p585_p8 = pnand %p563_p7, %p767_p6 }
 0x1dd   : > { %s463_s24 = scalar_lea.sflag [#allocation4], %s462_s22 }
 0x1de   : > { %p586_p9 = pneg %p585_p8 }
 0x1e0   : > { %681 = dma.done.wait (%p586_p9), %s463_s24, 32  }
 0x1e1   : > { %683 = vsyncadd (%p586_p9), %s463_s24, 4294967264  ;;  %p10_p5 = scmp.ge.s32.totalorder %s750_s18, 4   ;;  %s908_s12 = smov %s690_s13 }
 0x1e2   : > { %s909_s13 = smov %s694_s14  ;;  %s910_s14 = smov %s761_s23 }
 0x1e3   : > { %s911_s15 = smov %s750_s18  ;;  %12 = sbr.rel (!%p10_p5) target bundleno = 3 (0x3), region = 221 }
 0x1e8   :  { %476 = vsyncpa [#allocation4], 1 }
 0x1e9   :  { %478 = vsyncpa [#allocation4 + $0x1], 1 }

// kernel: custom-call.9
= control target key start
LH: loop header
LB: loop body
LE: loop exit
PB: predicated region body
PF: predicated region fallthrough
CT: control target
= control target key end

     0   :  { %s392_s6 = smov 0   ;;  %s394_s7 = smov 0   ;;  %s455_s0 = inlined_call_operand.vmem [shape: f32[2,1,6,6], index: 0, kind: input, shape index: {}]   ;;  %s456_s1 = inlined_call_operand.vmem [shape: f32[2,1,6,6], index: 1, kind: output, shape index: {}]  }
   0x1   :  { %s396_s8 = smov 0  }
   0x2 LB: > { %s318_s9 = sadd.s32 4294967295, %s379_s8   ;;  %s33_s10 = sadd.s32 1, %s375_s7  ;;  %s379_s8 = sphi %s396_s8, %s7_s8   ;;  %s375_s7 = sphi %s394_s7, %s458_s7   ;;  %s371_s6 = sphi %s392_s6, %s457_s6  }
   0x3   : > { %p35_p0 = scmp.ge.s32.totalorder %s33_s10, 2  ;;  %p320_p1 = scmp.ge.s32.totalorder %s379_s8, 2 }
   0x4   : > { %s49_s11 = sand.u32 (!%p320_p1), 1, %s379_s8   ;;  %s322_s12 = sshll.u32 (!%p320_p1), %s375_s7, 3 }
   0x5   : > { %s460_s10 = smov (%p35_p0, %s33_s10), 0  ;;  %47 = sbr.rel (%p320_p1) target bundleno = 12 (0xc), region = 16 }
   0x6   : > { %s321_s13 = sshll.u32 (!%p320_p1), %s49_s11, 3  ;;  %s56_s16 = scalar_lea.vmem (!%p320_p1), %s455_s0, %s322_s12 }
   0x7   : > { %s51_s17 = scalar_lea.vmem (!%p320_p1), [#allocation0], %s321_s13 }
   0xa   : > { %v85_v0 = vld [vmem:[%s56_s16] sm:$0xff] }
   0xb   : > { %86 = vst [vmem:[%s51_s17] sm:$0xff] %v85_v0 }
   0xc PF: > { %p323_p2 = scmp.ge.s32.totalorder %s379_s8, 1  ;;  %p91_p3 = scmp.lt.s32.totalorder %s379_s8, 3 }
   0xe   : > { %p92_p4 = pnand %p323_p2, %p91_p3 }
  0x10   : > { %95 = sbr.rel (%p92_p4) target bundleno = 771 (0x303), region = 54 }
  0x15   : > { %s98_s18 = sand.u32 1, %s318_s9   ;;  %v109_v1 = vlaneseq  ;;  %v381_v19 = vmov -1.0   ;;  %s327_s21 = sshll.u32 %s371_s6, 3 }
  0x16   : > { %s324_s19 = sshll.u32 %s98_s18, 3  ;;  %s225_s24 = scalar_lea.vmem %s456_s1, %s327_s21 }
  0x17   : > { %v419_v2 = vand.u32 127, %v109_v1  ;;  %v113_v3 = vshrl.u32 %v109_v1, 7  ;;  %s100_s20 = scalar_lea.vmem [#allocation0], %s324_s19 }
  0x18   : > { %v116_v4 = vld [vmem:[%s100_s20] sm:$0xff] }
  0x19   : > { %vm115_vm0 = vcmp.eq.s32.totalorder %v113_v3, %v419_v2  ;;  %vm111_vm1 = vcmp.lt.s32.totalorder %v419_v2, 6  ;;  %vm120_vm2 = vcmp.le.s32.totalorder %v113_v3, %v419_v2  ;;  %vm147_vm8 = vcmp.eq.s32.totalorder %v419_v2, 5 }
  0x1a   : > { %v117_v5 = vsel %vm115_vm0, %v116_v4, 0.0  ;;  %vm121_vm3 = vmand %vm120_vm2, %vm111_vm1  ;;  %vm144_vm9 = vcmp.eq.s32.totalorder %v419_v2, %v113_v3  ;;  %v148_v20 = vsel %vm147_vm8, 1.0, %v381_v19  ;;  %vm155_vm10 = vcmp.eq.s32.totalorder %v419_v2, 4 }
  0x1b   : > { %118 = vadd.xlane.f32.xlu0 %v117_v5  ;;  %v122_v14 = vsel %vm121_vm3, %v116_v4, 0.0  ;;  %v149_v21 = vsel %vm144_vm9, %v148_v20, 0.0  ;;  %vm165_vm11 = vcmp.eq.s32.totalorder %v419_v2, 3  ;;  %vm175_vm12 = vcmp.eq.s32.totalorder %v419_v2, 2 }
  0x1c   : > { %vm185_vm13 = vcmp.eq.s32.totalorder %v419_v2, 1  ;;  %vm194_vm14 = vcmp.eq.s32.totalorder %v419_v2, 0 }
  0x8e   : > { %v422_v6 = vpop.xlane.xlu0 %118 }
  0x8f   : > { %355 = vrcp.f32 %v422_v6  ;;  %v134_v10 = vand.u32 2147483648, %v422_v6  ;;  %v132_v12 = vand.u32 2147483647, %v422_v6  ;;  %vm128_vm5 = vweird.f32 %v422_v6 }
  0x91   : > { %v135_v15 = vor.u32 1.1754944e-38, %v134_v10  ;;  %vm133_vm7 = vcmp.eq.f32.partialorder %v132_v12, 8.507059e+37 }
  0x95   : > { %v356_v7 = vpop.eup %355 }
  0x96   : > { %v124_v8 = vmul.f32 %v356_v7, %v422_v6  ;;  %vm129_vm4 = vweird.f32 %v356_v7 }
  0x97   : > { %vm130_vm6 = vmor %vm128_vm5, %vm129_vm4 }
  0x98   : > { %v125_v9 = vsub.f32 1.0, %v124_v8 }
  0x9a   : > { %v126_v11 = vmul.f32 %v356_v7, %v125_v9 }
  0x9c   : > { %v127_v13 = vadd.f32 %v356_v7, %v126_v11 }
  0x9e   : > { %v131_v16 = vsel %vm130_vm6, %v356_v7, %v127_v13 }
  0x9f   : > { %v136_v17 = vsel %vm133_vm7, %v135_v15, %v131_v16 }
  0xa0   : > { %v137_v18 = vmul.f32 %v136_v17, %v122_v14 }
  0xa2   : > { %138 = vst [vmem:[#allocation2] sm:$0xff] %v137_v18 }
  0xa9   : > { %v151_v22 = vld [vmem:[#allocation2 + $0x4] ss:$0 sm:$0xff]  ;;  %v161_v25 = vld [vmem:[#allocation2 + $0x3] ss:$0 sm:$0xff]  ;;  %v171_v30 = vld [vmem:[#allocation2 + $0x2] ss:$0 sm:$0xff] }
  0xaa   : > { %v152_v23 = vxor.u32 2147483648, %v151_v22  ;;  %v162_v27 = vxor.u32 2147483648, %v161_v25  ;;  %v172_v32 = vxor.u32 2147483648, %v171_v30  ;;  %v181_v35 = vld [vmem:[#allocation2 + $0x1] ss:$0 sm:$0xff] }
  0xab   : > { %v182_v37 = vxor.u32 2147483648, %v181_v35  ;;  %v190_v40 = vld [vmem:[#allocation2] ss:$0 sm:$0xff] }
  0xac   : > { %v156_v24 = vmul.f32 %v152_v23, %v149_v21  ;;  %v191_v42 = vxor.u32 2147483648, %v190_v40 }
  0xae   : > { %157 = vadd.xlane.f32.xlu0 %v156_v24 }
 0x121   : > { %v158_v26 = vpop.xlane.xlu0 %157 }
 0x122   : > { %v159_v28 = vsel %vm155_vm10, %v158_v26, %v149_v21 }
 0x123   : > { %v166_v29 = vmul.f32 %v162_v27, %v159_v28 }
 0x125   : > { %167 = vadd.xlane.f32.xlu1 %v166_v29 }
 0x198   : > { %v168_v31 = vpop.xlane.xlu1 %167 }
 0x199   : > { %v169_v33 = vsel %vm165_vm11, %v168_v31, %v159_v28 }
 0x19a   : > { %v176_v34 = vmul.f32 %v172_v32, %v169_v33 }
 0x19c   : > { %177 = vadd.xlane.f32.xlu1 %v176_v34 }
 0x20f   : > { %v178_v36 = vpop.xlane.xlu1 %177 }
 0x210   : > { %v179_v38 = vsel %vm175_vm12, %v178_v36, %v169_v33 }
 0x211   : > { %v186_v39 = vmul.f32 %v182_v37, %v179_v38 }
 0x213   : > { %187 = vadd.xlane.f32.xlu2 %v186_v39 }
 0x286   : > { %v188_v41 = vpop.xlane.xlu2 %187 }
 0x287   : > { %v189_v43 = vsel %vm185_vm13, %v188_v41, %v179_v38 }
 0x288   : > { %v195_v44 = vmul.f32 %v191_v42, %v189_v43 }
 0x28a   : > { %196 = vadd.xlane.f32.xlu2 %v195_v44 }
 0x2fd   : > { %v197_v45 = vpop.xlane.xlu2 %196 }
 0x2fe   : > { %v198_v46 = vsel %vm194_vm14, %v197_v45, %v189_v43 }
 0x2ff   : > { %v213_v47 = vmul.f32 %v198_v46, %v136_v17 }
 0x301   : > { %v215_v48 = vsel %vm128_vm5, %v198_v46, %v213_v47 }
 0x302   : > { %255 = vst [vmem:[%s225_s24] sm:$0xff] %v215_v48 }
 0x303 PF: > { %s7_s8 = sadd.s32 1, %s379_s8   ;;  %s457_s6 = smov %s375_s7 }
 0x304   : > { %p4_p5 = scmp.ge.s32.totalorder %s7_s8, 4   ;;  %s458_s7 = smov %s460_s10 }
 0x306   :  { %6 = sbr.rel (!%p4_p5) target bundleno = 2 (0x2), region = 122 }

// kernel: custom-call.10
= control target key start
LH: loop header
LB: loop body
LE: loop exit
PB: predicated region body
PF: predicated region fallthrough
CT: control target
= control target key end

     0   :  { %s393_s6 = smov 0   ;;  %s395_s7 = smov 0   ;;  %s456_s0 = inlined_call_operand.vmem [shape: f32[2,1,6,6], index: 0, kind: input, shape index: {}]   ;;  %s457_s1 = inlined_call_operand.vmem [shape: f32[2,1,6,6], index: 1, kind: output, shape index: {}]  }
   0x1   :  { %s397_s8 = smov 0  }
   0x2 LB: > { %s319_s9 = sadd.s32 4294967295, %s380_s8   ;;  %s33_s10 = sadd.s32 1, %s376_s7  ;;  %s380_s8 = sphi %s397_s8, %s7_s8   ;;  %s376_s7 = sphi %s395_s7, %s459_s7   ;;  %s372_s6 = sphi %s393_s6, %s458_s6  }
   0x3   : > { %p35_p0 = scmp.ge.s32.totalorder %s33_s10, 2  ;;  %p321_p1 = scmp.ge.s32.totalorder %s380_s8, 2 }
   0x4   : > { %s49_s11 = sand.u32 (!%p321_p1), 1, %s380_s8   ;;  %s323_s12 = sshll.u32 (!%p321_p1), %s376_s7, 3 }
   0x5   : > { %s461_s10 = smov (%p35_p0, %s33_s10), 0  ;;  %47 = sbr.rel (%p321_p1) target bundleno = 12 (0xc), region = 16 }
   0x6   : > { %s322_s13 = sshll.u32 (!%p321_p1), %s49_s11, 3  ;;  %s56_s16 = scalar_lea.vmem (!%p321_p1), %s456_s0, %s323_s12 }
   0x7   : > { %s51_s17 = scalar_lea.vmem (!%p321_p1), [#allocation0], %s322_s13 }
   0xa   : > { %v85_v0 = vld [vmem:[%s56_s16] sm:$0xff] }
   0xb   : > { %86 = vst [vmem:[%s51_s17] sm:$0xff] %v85_v0 }
   0xc PF: > { %p324_p2 = scmp.ge.s32.totalorder %s380_s8, 1  ;;  %p91_p3 = scmp.lt.s32.totalorder %s380_s8, 3 }
   0xe   : > { %p92_p4 = pnand %p324_p2, %p91_p3 }
  0x10   : > { %95 = sbr.rel (%p92_p4) target bundleno = 771 (0x303), region = 54 }
  0x15   : > { %s98_s18 = sand.u32 1, %s319_s9   ;;  %v109_v1 = vlaneseq  ;;  %v382_v19 = vmov -1.0   ;;  %s328_s21 = sshll.u32 %s372_s6, 3 }
  0x16   : > { %s325_s19 = sshll.u32 %s98_s18, 3  ;;  %s226_s24 = scalar_lea.vmem %s457_s1, %s328_s21 }
  0x17   : > { %v420_v2 = vand.u32 127, %v109_v1  ;;  %v113_v3 = vshrl.u32 %v109_v1, 7  ;;  %s100_s20 = scalar_lea.vmem [#allocation0], %s325_s19 }
  0x18   : > { %v116_v4 = vld [vmem:[%s100_s20] sm:$0xff] }
  0x19   : > { %vm115_vm0 = vcmp.eq.s32.totalorder %v113_v3, %v420_v2  ;;  %vm111_vm1 = vcmp.lt.s32.totalorder %v420_v2, 6  ;;  %vm120_vm2 = vcmp.ge.s32.totalorder %v113_v3, %v420_v2  ;;  %vm147_vm8 = vcmp.eq.s32.totalorder %v420_v2, 0 }
  0x1a   : > { %v117_v5 = vsel %vm115_vm0, %v116_v4, 0.0  ;;  %vm121_vm3 = vmand %vm120_vm2, %vm111_vm1  ;;  %vm144_vm9 = vcmp.eq.s32.totalorder %v420_v2, %v113_v3  ;;  %v148_v20 = vsel %vm147_vm8, 1.0, %v382_v19  ;;  %vm155_vm10 = vcmp.eq.s32.totalorder %v420_v2, 1 }
  0x1b   : > { %118 = vadd.xlane.f32.xlu0 %v117_v5  ;;  %v122_v14 = vsel %vm121_vm3, %v116_v4, 0.0  ;;  %v149_v21 = vsel %vm144_vm9, %v148_v20, 0.0  ;;  %vm165_vm11 = vcmp.eq.s32.totalorder %v420_v2, 2  ;;  %vm175_vm12 = vcmp.eq.s32.totalorder %v420_v2, 3 }
  0x1c   : > { %vm185_vm13 = vcmp.eq.s32.totalorder %v420_v2, 4  ;;  %vm195_vm14 = vcmp.eq.s32.totalorder %v420_v2, 5 }
  0x8e   : > { %v423_v6 = vpop.xlane.xlu0 %118 }
  0x8f   : > { %356 = vrcp.f32 %v423_v6  ;;  %v134_v10 = vand.u32 2147483648, %v423_v6  ;;  %v132_v12 = vand.u32 2147483647, %v423_v6  ;;  %vm128_vm5 = vweird.f32 %v423_v6 }
  0x91   : > { %v135_v15 = vor.u32 1.1754944e-38, %v134_v10  ;;  %vm133_vm7 = vcmp.eq.f32.partialorder %v132_v12, 8.507059e+37 }
  0x95   : > { %v357_v7 = vpop.eup %356 }
  0x96   : > { %v124_v8 = vmul.f32 %v357_v7, %v423_v6  ;;  %vm129_vm4 = vweird.f32 %v357_v7 }
  0x97   : > { %vm130_vm6 = vmor %vm128_vm5, %vm129_vm4 }
  0x98   : > { %v125_v9 = vsub.f32 1.0, %v124_v8 }
  0x9a   : > { %v126_v11 = vmul.f32 %v357_v7, %v125_v9 }
  0x9c   : > { %v127_v13 = vadd.f32 %v357_v7, %v126_v11 }
  0x9e   : > { %v131_v16 = vsel %vm130_vm6, %v357_v7, %v127_v13 }
  0x9f   : > { %v136_v17 = vsel %vm133_vm7, %v135_v15, %v131_v16 }
  0xa0   : > { %v137_v18 = vmul.f32 %v136_v17, %v122_v14 }
  0xa2   : > { %138 = vst [vmem:[#allocation2] sm:$0xff] %v137_v18 }
  0xa9   : > { %v151_v22 = vld [vmem:[#allocation2 + $0x1] ss:$0 sm:$0xff]  ;;  %v161_v25 = vld [vmem:[#allocation2 + $0x2] ss:$0 sm:$0xff]  ;;  %v171_v30 = vld [vmem:[#allocation2 + $0x3] ss:$0 sm:$0xff] }
  0xaa   : > { %v152_v23 = vxor.u32 2147483648, %v151_v22  ;;  %v162_v27 = vxor.u32 2147483648, %v161_v25  ;;  %v172_v32 = vxor.u32 2147483648, %v171_v30  ;;  %v181_v35 = vld [vmem:[#allocation2 + $0x4] ss:$0 sm:$0xff] }
  0xab   : > { %v182_v37 = vxor.u32 2147483648, %v181_v35  ;;  %v191_v40 = vld [vmem:[#allocation2 + $0x5] ss:$0 sm:$0xff] }
  0xac   : > { %v156_v24 = vmul.f32 %v152_v23, %v149_v21  ;;  %v192_v42 = vxor.u32 2147483648, %v191_v40 }
  0xae   : > { %157 = vadd.xlane.f32.xlu0 %v156_v24 }
 0x121   : > { %v158_v26 = vpop.xlane.xlu0 %157 }
 0x122   : > { %v159_v28 = vsel %vm155_vm10, %v158_v26, %v149_v21 }
 0x123   : > { %v166_v29 = vmul.f32 %v162_v27, %v159_v28 }
 0x125   : > { %167 = vadd.xlane.f32.xlu1 %v166_v29 }
 0x198   : > { %v168_v31 = vpop.xlane.xlu1 %167 }
 0x199   : > { %v169_v33 = vsel %vm165_vm11, %v168_v31, %v159_v28 }
 0x19a   : > { %v176_v34 = vmul.f32 %v172_v32, %v169_v33 }
 0x19c   : > { %177 = vadd.xlane.f32.xlu1 %v176_v34 }
 0x20f   : > { %v178_v36 = vpop.xlane.xlu1 %177 }
 0x210   : > { %v179_v38 = vsel %vm175_vm12, %v178_v36, %v169_v33 }
 0x211   : > { %v186_v39 = vmul.f32 %v182_v37, %v179_v38 }
 0x213   : > { %187 = vadd.xlane.f32.xlu2 %v186_v39 }
 0x286   : > { %v188_v41 = vpop.xlane.xlu2 %187 }
 0x287   : > { %v189_v43 = vsel %vm185_vm13, %v188_v41, %v179_v38 }
 0x288   : > { %v196_v44 = vmul.f32 %v192_v42, %v189_v43 }
 0x28a   : > { %197 = vadd.xlane.f32.xlu2 %v196_v44 }
 0x2fd   : > { %v198_v45 = vpop.xlane.xlu2 %197 }
 0x2fe   : > { %v199_v46 = vsel %vm195_vm14, %v198_v45, %v189_v43 }
 0x2ff   : > { %v214_v47 = vmul.f32 %v199_v46, %v136_v17 }
 0x301   : > { %v216_v48 = vsel %vm128_vm5, %v199_v46, %v214_v47 }
 0x302   : > { %256 = vst [vmem:[%s226_s24] sm:$0xff] %v216_v48 }
 0x303 PF: > { %s7_s8 = sadd.s32 1, %s380_s8   ;;  %s458_s6 = smov %s376_s7 }
 0x304   : > { %p4_p5 = scmp.ge.s32.totalorder %s7_s8, 4   ;;  %s459_s7 = smov %s461_s10 }
 0x306   :  { %6 = sbr.rel (!%p4_p5) target bundleno = 2 (0x2), region = 123 }

// kernel: weighted_svd_po2pl.2
= control target key start
LH: loop header
LB: loop body
LE: loop exit
PB: predicated region body
PF: predicated region fallthrough
CT: control target
= control target key end

     0   :  { %s1692_s23 = smov 0   ;;  %s2160_s0 = inlined_call_operand.vmem [shape: f32[2,16,128], index: 0, kind: input, shape index: {}]   ;;  %s2161_s1 = inlined_call_operand.vmem [shape: f32[2,128,1], index: 1, kind: input, shape index: {}]   ;;  %s2162_s2 = inlined_call_operand.<no memory space> [shape: f32[], index: 2, kind: input, shape index: {}]   ;;  %s2163_s3 = inlined_call_operand.vmem [shape: f32[2,128,3], index: 3, kind: input, shape index: {}]   ;;  %s2164_s4 = inlined_call_operand.vmem [shape: f32[8], index: 4, kind: input, shape index: {}]   ;;  %s2165_s5 = inlined_call_operand.vmem [shape: f32[8], index: 5, kind: input, shape index: {}]   ;;  %s2166_s6 = inlined_call_operand.vmem [shape: f32[2,8,8], index: 6, kind: output, shape index: {}]  }
   0x1   :  { %v1690_v0 = vstv %s2162_s2 }
   0x2 LB: > { %s1515_s24 = sadd.s32 4294967295, %s1649_s23   ;;  %p1519_p0 = scmp.ge.s32.totalorder %s1649_s23, 1  ;;  %s1649_s23 = sphi %s1692_s23, %s18_s23  }
   0x3   : > { %p223_p1 = scmp.lt.s32.totalorder %s1649_s23, 3 }
   0x5   : > { %p224_p2 = pnand %p1519_p0, %p223_p1 }
   0x6   : > { %p266_p3 = scmp.lt.s32.totalorder (!%p224_p2), %s1515_s24, 1  ;;  %s1651_s28 = smov (!%p224_p2), 4  }
   0x7   : > { %227 = sbr.rel (%p224_p2) target bundleno = 757 (0x2f5), region = 40 }
   0xc   : > { %v298_v1 = vlaneseq  ;;  %s2177_s24 = smov (!%p266_p3, %s1515_s24), 1  ;;  %vm2170_vm2 = vcmask 1042432   ;;  %vm2169_vm3 = vcmask 1043456   ;;  %vm2168_vm4 = vcmask 1044480  }
   0xd   : > { %s1594_s2 = sshll.u32 %s2177_s24, 7  ;;  %s1593_s29 = sshll.u32 %s2177_s24, 4  ;;  %vm2167_vm6 = vcmask 64512  }
   0xe   : > { %v1702_v2 = vand.u32 127, %v298_v1  ;;  %s1713_s27 = scalar_lea.vmem %s2161_s1, %s1594_s2  ;;  %s1849_s8 = scalar_lea.vmem %s2160_s0, %s1593_s29 }
   0xf   : > { %v1545_v4 = vld [vmem:[%s1713_s27 + $0x50] sm:$0xff]  ;;  %v1547_v5 = vld [vmem:[%s1713_s27 + $0x58] sm:$0xff]  ;;  %v297_v10 = vld [vmem:[%s1713_s27] sm:$0xff]  ;;  %s1866_s11 = scalar_lea.vmem %s2163_s3, %s1594_s2  ;;  %s1526_s16 = sshll.u32 %s2177_s24, 3 }
  0x10   : > { %v1706_v3 = vadd.s32 128, %v1702_v2  ;;  %vm305_vm0 = vcmp.lt.s32.totalorder %v1702_v2, 124  ;;  %v1527_v11 = vld [vmem:[%s1713_s27 + $0x8] sm:$0xff]  ;;  %v1537_v12 = vld [vmem:[%s1713_s27 + $0x30] sm:$0xff]  ;;  %v1549_v17 = vld [vmem:[%s1713_s27 + $0x60] sm:$0xff]  ;;  %vm313_vm5 = vcmp.lt.s32.totalorder %v1702_v2, 3  ;;  %s293_s19 = scalar_lea.vmem %s2166_s6, %s1526_s16 }
  0x11   : > { %v1529_v21 = vld [vmem:[%s1713_s27 + $0x10] sm:$0xff]  ;;  %v1539_v22 = vld [vmem:[%s1713_s27 + $0x38] sm:$0xff]  ;;  %v1551_v26 = vld [vmem:[%s1713_s27 + $0x68] sm:$0xff] }
  0x12   : > { %vm301_vm1 = vcmp.lt.s32.totalorder %v1706_v3, 129  ;;  %v1531_v30 = vld [vmem:[%s1713_s27 + $0x18] sm:$0xff]  ;;  %v1541_v31 = vld [vmem:[%s1713_s27 + $0x40] sm:$0xff]  ;;  %v1553_v35 = vld [vmem:[%s1713_s27 + $0x70] sm:$0xff] }
  0x13   : > { %v702_v6 = vsel %vm301_vm1, %v1545_v4, %v1690_v0  ;;  %v742_v7 = vsel %vm301_vm1, %v1547_v5, %v1690_v0  ;;  %v542_v13 = vsel %vm301_vm1, %v1537_v12, %v1690_v0  ;;  %v302_v14 = vsel %vm301_vm1, %v297_v10, %v1690_v0  ;;  %v1533_v39 = vld [vmem:[%s1713_s27 + $0x20] sm:$0xff]  ;;  %v1543_v40 = vld [vmem:[%s1713_s27 + $0x48] sm:$0xff]  ;;  %v1555_v44 = vld [vmem:[%s1713_s27 + $0x78] sm:$0xff] }
  0x14   : > { %v706_v8 = vsel %vm305_vm0, %v702_v6, %v1690_v0  ;;  %v746_v9 = vsel %vm305_vm0, %v742_v7, %v1690_v0  ;;  %v342_v15 = vsel %vm301_vm1, %v1527_v11, %v1690_v0  ;;  %v546_v16 = vsel %vm305_vm0, %v542_v13, %v1690_v0  ;;  %v1535_v48 = vld [vmem:[%s1713_s27 + $0x28] sm:$0xff]  ;;  %v1852_v52 = vld [vmem:[%s1849_s8] sm:$0xff]  ;;  %v1538_v63 = vld [vmem:[%s1866_s11 + $0x30] sm:$0xff] }
  0x15   : > { %707 = vrot.lane.b32.xlu0 %v706_v8, %s1651_s28  ;;  %747 = vrot.lane.b32.xlu1 %v746_v9, %s1651_s28  ;;  %v306_v18 = vsel %vm305_vm0, %v302_v14, %v1690_v0  ;;  %v346_v19 = vsel %vm305_vm0, %v342_v15, %v1690_v0  ;;  %v782_v20 = vsel %vm301_vm1, %v1549_v17, %v1690_v0  ;;  %v1855_v53 = vrot.slane %v1852_v52, 3  ;;  %v1879_v3 = vld [vmem:[%s2165_s5] ss:$0 sm:$0xff]  ;;  %v1546_v9 = vld [vmem:[%s1866_s11 + $0x50] sm:$0xff] }
  0x16   : > { %547 = vrot.lane.b32.xlu2 %v546_v16, %s1651_s28  ;;  %v786_v23 = vsel %vm305_vm0, %v782_v20, %v1690_v0  ;;  %v382_v24 = vsel %vm301_vm1, %v1529_v21, %v1690_v0  ;;  %v582_v25 = vsel %vm301_vm1, %v1539_v22, %v1690_v0  ;;  %v822_v29 = vsel %vm301_vm1, %v1551_v26, %v1690_v0  ;;  %v1885_v7 = vld [vmem:[%s2164_s4] ss:$0 sm:$0xff]  ;;  %v1548_v11 = vld [vmem:[%s1866_s11 + $0x58] sm:$0xff] }
  0x17   : > { %v386_v27 = vsel %vm305_vm0, %v382_v24, %v1690_v0  ;;  %v586_v28 = vsel %vm305_vm0, %v582_v25, %v1690_v0  ;;  %v826_v32 = vsel %vm305_vm0, %v822_v29, %v1690_v0  ;;  %v422_v33 = vsel %vm301_vm1, %v1531_v30, %v1690_v0  ;;  %v309_v14 = vld [vmem:[%s1866_s11] sm:$0xff] }
  0x18   : > { %v622_v34 = vsel %vm301_vm1, %v1541_v31, %v1690_v0  ;;  %v426_v36 = vsel %vm305_vm0, %v422_v33, %v1690_v0  ;;  %v862_v38 = vsel %vm301_vm1, %v1553_v35, %v1690_v0  ;;  %v462_v42 = vsel %vm301_vm1, %v1533_v39, %v1690_v0  ;;  %v1550_v20 = vld [vmem:[%s1866_s11 + $0x60] sm:$0xff]  ;;  %v1552_v35 = vld [vmem:[%s1866_s11 + $0x68] sm:$0xff] }
  0x19   : > { %v626_v37 = vsel %vm305_vm0, %v622_v34, %v1690_v0  ;;  %v866_v41 = vsel %vm305_vm0, %v862_v38, %v1690_v0  ;;  %v662_v43 = vsel %vm301_vm1, %v1543_v40, %v1690_v0  ;;  %v466_v45 = vsel %vm305_vm0, %v462_v42, %v1690_v0  ;;  %v1530_v38 = vld [vmem:[%s1866_s11 + $0x10] sm:$0xff] }
  0x1a   : > { %v666_v46 = vsel %vm305_vm0, %v662_v43, %v1690_v0  ;;  %v902_v47 = vsel %vm301_vm1, %v1555_v44, %v1690_v0  ;;  %v502_v50 = vsel %vm301_vm1, %v1535_v48, %v1690_v0  ;;  %v953_v54 = vadd.f32 %v1855_v53, %v1852_v52 }
  0x1b   : > { %v906_v49 = vsel %vm305_vm0, %v902_v47, %v1690_v0  ;;  %v506_v51 = vsel %vm305_vm0, %v502_v50, %v1690_v0  ;;  %v555_v1 = vsel %vm313_vm5, %v1538_v63, %v1690_v0  ;;  %v715_v10 = vsel %vm313_vm5, %v1546_v9, %v1690_v0 }
  0x1c   : > { %v954_v55 = vmul.f32 %v953_v54, %v953_v54  ;;  %v558_v4 = vmax.f32 %v555_v1, %v1879_v3  ;;  %v718_v12 = vmax.f32 %v715_v10, %v1879_v3  ;;  %v755_v13 = vsel %vm313_vm5, %v1548_v11, %v1690_v0 }
  0x1d   : > { %307 = vrot.lane.b32.xlu0 %v306_v18, %s1651_s28  ;;  %347 = vrot.lane.b32.xlu1 %v346_v19, %s1651_s28  ;;  %v758_v18 = vmax.f32 %v755_v13, %v1879_v3  ;;  %v314_v19 = vsel %vm313_vm5, %v309_v14, %v1690_v0  ;;  %v795_v26 = vsel %vm313_vm5, %v1550_v20, %v1690_v0 }
  0x1e   : > { %787 = vrot.lane.b32.xlu2 %v786_v23, %s1651_s28  ;;  %v956_v56 = vrot.slane %v954_v55, 1  ;;  %v959_v58 = vrot.slane %v954_v55, 2  ;;  %v1528_v23 = vld [vmem:[%s1866_s11 + $0x8] sm:$0xff]  ;;  %v319_v25 = vmax.f32 %v314_v19, %v1879_v3  ;;  %v798_v30 = vmax.f32 %v795_v26, %v1879_v3 }
  0x1f   : > { %v395_v44 = vsel %vm313_vm5, %v1530_v38, %v1690_v0 }
  0x20   : > { %v958_v57 = vadd.f32 %v956_v56, %v954_v55  ;;  %v1554_v55 = vld [vmem:[%s1866_s11 + $0x70] sm:$0xff] }
  0x22   : > { %v961_v59 = vadd.f32 %v959_v58, %v958_v57  ;;  %v1532_v58 = vld [vmem:[%s1866_s11 + $0x18] sm:$0xff] }
  0x23   : > { %v435_v63 = vsel %vm313_vm5, %v1532_v58, %v1690_v0 }
  0x24   : > { %v963_v60 = vrot.slane %v961_v59, 5  ;;  %v438_v11 = vmax.f32 %v435_v63, %v1879_v3 }
  0x25   : > { %387 = vrot.lane.b32.xlu0 %v386_v27, %s1651_s28  ;;  %587 = vrot.lane.b32.xlu1 %v586_v28, %s1651_s28  ;;  %v355_v27 = vsel %vm313_vm5, %v1528_v23, %v1690_v0  ;;  %v1540_v28 = vld [vmem:[%s1866_s11 + $0x38] sm:$0xff] }
  0x26   : > { %827 = vrot.lane.b32.xlu2 %v826_v32, %s1651_s28  ;;  %v966_v61 = vsel %vm2170_vm2, %v953_v54, %v963_v60  ;;  %v358_v34 = vmax.f32 %v355_v27, %v1879_v3 }
  0x27   : > { %v968_v62 = vsel %vm2169_vm3, %v966_v61, 1.0  ;;  %v875_v61 = vsel %vm313_vm5, %v1554_v55, %v1690_v0 }
  0x28   : > { %1597 = vmatpush.msk.msra.mxu3 %vm2168_vm4, %v968_v62  ;;  %1557 = vmatpush.msk.msra.mxu0 %vm2168_vm4, %v968_v62 }
  0x29   : > { %1596 = vmatpush.msk.msra.mxu2 %vm2168_vm4, %v968_v62 }
  0x2d   : > { %427 = vrot.lane.b32.xlu0 %v426_v36, %s1651_s28  ;;  %627 = vrot.lane.b32.xlu1 %v626_v37, %s1651_s28  ;;  %v595_v36 = vsel %vm313_vm5, %v1540_v28, %v1690_v0 }
  0x2e   : > { %867 = vrot.lane.b32.xlu2 %v866_v41, %s1651_s28  ;;  %v835_v41 = vsel %vm313_vm5, %v1552_v35, %v1690_v0  ;;  %v598_v43 = vmax.f32 %v595_v36, %v1879_v3 }
  0x35   : > { %467 = vrot.lane.b32.xlu0 %v466_v45, %s1651_s28  ;;  %667 = vrot.lane.b32.xlu1 %v666_v46, %s1651_s28  ;;  %v1542_v45 = vld [vmem:[%s1866_s11 + $0x40] sm:$0xff]  ;;  %v838_v46 = vmax.f32 %v835_v41, %v1879_v3 }
  0x36   : > { %907 = vrot.lane.b32.xlu2 %v906_v49, %s1651_s28  ;;  %v635_v56 = vsel %vm313_vm5, %v1542_v45, %v1690_v0 }
  0x37   : > { %v638_v62 = vmax.f32 %v635_v56, %v1879_v3 }
  0x3d   : > { %507 = vrot.lane.b32.xlu0 %v506_v51, %s1651_s28  ;;  %v398_v51 = vmax.f32 %v395_v44, %v1879_v3 }
  0x70   : > { %v548_v5 = vpop.permute.xlu2 %547 }
  0x71   : > { %v562_v6 = vmax.f32 %v558_v4, %v548_v5  ;;  %v1544_v4 = vld [vmem:[%s1866_s11 + $0x48] sm:$0xff]  ;;  %v878_v5 = vmax.f32 %v875_v61, %v1879_v3 }
  0x72   : > { %v675_v13 = vsel %vm313_vm5, %v1544_v4, %v1690_v0 }
  0x73   : > { %v566_v8 = vmax.f32 %v562_v6, %v1885_v7  ;;  %v678_v19 = vmax.f32 %v675_v13, %v1879_v3 }
  0x75   : > { %1564 = vmatmul.msk.f32.vlgmr.msra.gmra.mxu2 %vm2167_vm6, %v566_v8 }
  0x78   : > { %v788_v22 = vpop.permute.xlu2 %787 }
  0x79   : > { %v802_v39 = vmax.f32 %v798_v30, %v788_v22 }
  0x7b   : > { %v806_v49 = vmax.f32 %v802_v39, %v1885_v7 }
  0x80   : > { %v828_v42 = vpop.permute.xlu2 %827 }
  0x81   : > { %v842_v59 = vmax.f32 %v838_v46, %v828_v42 }
  0x83   : > { %v846_v9 = vmax.f32 %v842_v59, %v1885_v7 }
  0x87   : > { %v708_v15 = vpop.permute.xlu0 %707  ;;  %v748_v16 = vpop.permute.xlu1 %747 }
  0x88   : > { %v722_v17 = vmax.f32 %v718_v12, %v708_v15  ;;  %v762_v24 = vmax.f32 %v758_v18, %v748_v16  ;;  %v868_v1 = vpop.permute.xlu2 %867  ;;  %v1556_v15 = vld [vmem:[%s1866_s11 + $0x78] sm:$0xff]  ;;  %v1534_v16 = vld [vmem:[%s1866_s11 + $0x20] sm:$0xff] }
  0x89   : > { %v915_v20 = vsel %vm313_vm5, %v1556_v15, %v1690_v0 }
  0x8a   : > { %v726_v21 = vmax.f32 %v722_v17, %v1885_v7  ;;  %v766_v32 = vmax.f32 %v762_v24, %v1885_v7  ;;  %v882_v17 = vmax.f32 %v878_v5, %v868_v1  ;;  %v918_v26 = vmax.f32 %v915_v20, %v1879_v3 }
  0x8c   : > { %1568 = vmatmul.msk.f32.vlgmr.msra.gmra.mxu3 %vm2167_vm6, %v726_v21  ;;  %v475_v21 = vsel %vm313_vm5, %v1534_v16, %v1690_v0  ;;  %v886_v22 = vmax.f32 %v882_v17, %v1885_v7 }
  0x8d   : > { %v478_v27 = vmax.f32 %v475_v21, %v1879_v3 }
  0x8f   : > { %v308_v29 = vpop.permute.xlu0 %307  ;;  %v348_v31 = vpop.permute.xlu1 %347 }
  0x90   : > { %v323_v33 = vmax.f32 %v319_v25, %v308_v29  ;;  %v362_v40 = vmax.f32 %v358_v34, %v348_v31  ;;  %v908_v29 = vpop.permute.xlu2 %907  ;;  %v1536_v31 = vld [vmem:[%s1866_s11 + $0x28] sm:$0xff] }
  0x91   : > { %v515_v34 = vsel %vm313_vm5, %v1536_v31, %v1690_v0 }
  0x92   : > { %v327_v37 = vmax.f32 %v323_v33, %v1885_v7  ;;  %v366_v50 = vmax.f32 %v362_v40, %v1885_v7 }
  0x94   : > { %1558 = vmatmul.msk.f32.vlgmr.msra.gmra.mxu0 %vm2167_vm6, %v327_v37  ;;  %1569 = vmatmul.msk.f32.gmra.mxu3 %vm2167_vm6, %v766_v32  ;;  %v922_v32 = vmax.f32 %v918_v26, %v908_v29  ;;  %v518_v37 = vmax.f32 %v515_v34, %v1879_v3 }
  0x96   : > { %v926_v35 = vmax.f32 %v922_v32, %v1885_v7 }
  0x97   : > { %v388_v47 = vpop.permute.xlu0 %387  ;;  %v588_v48 = vpop.permute.xlu1 %587 }
  0x98   : > { %v602_v54 = vmax.f32 %v598_v43, %v588_v48  ;;  %v402_v60 = vmax.f32 %v398_v51, %v388_v47 }
  0x9a   : > { %v606_v57 = vmax.f32 %v602_v54, %v1885_v7  ;;  %v406_v10 = vmax.f32 %v402_v60, %v1885_v7 }
  0x9c   : > { %1559 = vmatmul.msk.f32.gmra.mxu0 %vm2167_vm6, %v366_v50  ;;  %1570 = vmatmul.msk.f32.gmra.mxu3 %vm2167_vm6, %v806_v49 }
  0x9d   : > { %1565 = vmatmul.msk.f32.gmra.mxu2 %vm2167_vm6, %v606_v57 }
  0x9f   : > { %v428_v6 = vpop.permute.xlu0 %427  ;;  %v628_v8 = vpop.permute.xlu1 %627 }
  0xa0   : > { %v642_v12 = vmax.f32 %v638_v62, %v628_v8  ;;  %v442_v18 = vmax.f32 %v438_v11, %v428_v6 }
  0xa2   : > { %v646_v14 = vmax.f32 %v642_v12, %v1885_v7  ;;  %v446_v25 = vmax.f32 %v442_v18, %v1885_v7 }
  0xa4   : > { %1560 = vmatmul.msk.f32.gmra.mxu0 %vm2167_vm6, %v406_v10  ;;  %1571 = vmatmul.msk.f32.gmra.mxu3 %vm2167_vm6, %v846_v9 }
  0xa5   : > { %1566 = vmatmul.msk.f32.gmra.mxu2 %vm2167_vm6, %v646_v14 }
  0xa7   : > { %v468_v23 = vpop.permute.xlu0 %467  ;;  %v668_v24 = vpop.permute.xlu1 %667 }
  0xa8   : > { %v682_v28 = vmax.f32 %v678_v19, %v668_v24  ;;  %v482_v33 = vmax.f32 %v478_v27, %v468_v23 }
  0xaa   : > { %v686_v30 = vmax.f32 %v682_v28, %v1885_v7  ;;  %v486_v36 = vmax.f32 %v482_v33, %v1885_v7 }
  0xac   : > { %1561 = vmatmul.msk.f32.gmra.mxu0 %vm2167_vm6, %v446_v25  ;;  %1572 = vmatmul.msk.f32.gmra.mxu3 %vm2167_vm6, %v886_v22 }
  0xad   : > { %1567 = vmatmul.msk.f32.gmra.mxu2 %vm2167_vm6, %v686_v30 }
  0xaf   : > { %v508_v38 = vpop.permute.xlu0 %507 }
  0xb0   : > { %v522_v39 = vmax.f32 %v518_v37, %v508_v38 }
  0xb2   : > { %v526_v40 = vmax.f32 %v522_v39, %v1885_v7 }
  0xb4   : > { %1562 = vmatmul.msk.f32.gmra.mxu0 %vm2167_vm6, %v486_v36  ;;  %1573 = vmatmul.msk.f32.gmra.mxu3 %vm2167_vm6, %v926_v35 }
  0xbc   : > { %1563 = vmatmul.msk.f32.gmra.mxu0 %vm2167_vm6, %v526_v40 }
  0xf8   : > { %v1055_v44 = vpop.f32.mrf.mxu2 }
  0xf9   : > { %v2004_v60 = vmax.f32 %v1055_v44, 1e-08 }
 0x10f   : > { %v1067_v2 = vpop.f32.mrf.mxu3 }
 0x110   : > { %v2024_v11 = vmax.f32 %v1067_v2, 1e-08 }
 0x111   : > { %v1037_v41 = vpop.f32.mrf.mxu0 }
 0x112   : > { %v2000_v56 = vmax.f32 %v1037_v41, 1e-08 }
 0x117   : > { %v1070_v42 = vpop.f32.mrf.mxu3 }
 0x118   : > { %v2012_v1 = vmax.f32 %v1070_v42, 1e-08 }
 0x119   : > { %v1040_v43 = vpop.f32.mrf.mxu0 }
 0x11a   : > { %v2014_v4 = vmax.f32 %v1040_v43, 1e-08 }
 0x11f   : > { %v1073_v45 = vpop.f32.mrf.mxu3 }
 0x120   : > { %v1058_v47 = vpop.f32.mrf.mxu2  ;;  %v2032_v16 = vmax.f32 %v1073_v45, 1e-08 }
 0x121   : > { %v1043_v46 = vpop.f32.mrf.mxu0  ;;  %v1996_v55 = vmax.f32 %v1058_v47, 1e-08 }
 0x122   : > { %v2002_v57 = vmax.f32 %v1043_v46, 1e-08 }
 0x124   : > { %v1103_v6 = vmin.f32 %v2002_v57, %v2004_v60 }
 0x126   : > { %v1107_v18 = vmin.f32 %v1103_v6, %v2024_v11 }
 0x127   : > { %v1076_v48 = vpop.f32.mrf.mxu3 }
 0x128   : > { %v1061_v49 = vpop.f32.mrf.mxu2  ;;  %v2034_v17 = vmax.f32 %v1076_v48, 1e-08 }
 0x129   : > { %v1046_v3 = vpop.f32.mrf.mxu0  ;;  %v2010_v63 = vmax.f32 %v1061_v49, 1e-08 }
 0x12a   : > { %v1994_v54 = vmax.f32 %v1046_v3, 1e-08 }
 0x12c   : > { %v1104_v61 = vmin.f32 %v1994_v54, %v1996_v55 }
 0x12e   : > { %v1108_v14 = vmin.f32 %v1104_v61, %v2012_v1 }
 0x12f   : > { %v1079_v50 = vpop.f32.mrf.mxu3 }
 0x130   : > { %v1064_v59 = vpop.f32.mrf.mxu2  ;;  %v2026_v12 = vmax.f32 %v1079_v50, 1e-08 }
 0x131   : > { %v1049_v51 = vpop.f32.mrf.mxu0  ;;  %v2022_v10 = vmax.f32 %v1064_v59, 1e-08 }
 0x132   : > { %v1998_v7 = vmax.f32 %v1049_v51, 1e-08  ;;  %v1111_v21 = vmin.f32 %v1107_v18, %v2026_v12 }
 0x134   : > { %v1101_v62 = vmin.f32 %v2000_v56, %v1998_v7 }
 0x136   : > { %v1105_v13 = vmin.f32 %v1101_v62, %v2010_v63 }
 0x137   : > { %v1082_v58 = vpop.f32.mrf.mxu3 }
 0x138   : > { %v2018_v8 = vmax.f32 %v1082_v58, 1e-08  ;;  %v1109_v22 = vmin.f32 %v1105_v13, %v2032_v16 }
 0x139   : > { %v1052_v5 = vpop.f32.mrf.mxu0 }
 0x13a   : > { %v2020_v9 = vmax.f32 %v1052_v5, 1e-08  ;;  %v1112_v19 = vmin.f32 %v1108_v14, %v2018_v8  ;;  %1607 = vrcp.f32 %v2018_v8 }
 0x13b   : > { %1609 = vrcp.f32 %v2026_v12 }
 0x13c   : > { %v1102_v15 = vmin.f32 %v2014_v4, %v2020_v9  ;;  %v1114_v24 = vmin.f32 %v1111_v21, %v1112_v19  ;;  %1611 = vrcp.f32 %v2034_v17 }
 0x13d   : > { %1613 = vrcp.f32 %v2032_v16 }
 0x13e   : > { %v1106_v20 = vmin.f32 %v1102_v15, %v2022_v10  ;;  %1615 = vrcp.f32 %v2012_v1 }
 0x13f   : > { %1617 = vrcp.f32 %v2024_v11 }
 0x140   : > { %v1110_v23 = vmin.f32 %v1106_v20, %v2034_v17  ;;  %1619 = vrcp.f32 %v2022_v10 }
 0x141   : > { %1621 = vrcp.f32 %v2010_v63 }
 0x142   : > { %v1113_v25 = vmin.f32 %v1109_v22, %v1110_v23  ;;  %1623 = vrcp.f32 %v1996_v55 }
 0x143   : > { %1625 = vrcp.f32 %v2004_v60 }
 0x144   : > { %v1115_v26 = vmin.f32 %v1113_v25, %v1114_v24  ;;  %1627 = vrcp.f32 %v2020_v9 }
 0x145   : > { %1629 = vrcp.f32 %v1998_v7 }
 0x146   : > { %v1116_v27 = vrot.slane %v1115_v26, 4  ;;  %1631 = vrcp.f32 %v1994_v54 }
 0x147   : > { %1633 = vrcp.f32 %v2002_v57 }
 0x148   : > { %v1117_v28 = vmin.f32 %v1115_v26, %v1116_v27  ;;  %1635 = vrcp.f32 %v2014_v4 }
 0x149   : > { %1637 = vrcp.f32 %v2000_v56 }
 0x14a   : > { %v1118_v29 = vrot.slane %v1117_v28, 2 }
 0x14c   : > { %v1119_v30 = vmin.f32 %v1117_v28, %v1118_v29 }
 0x14e   : > { %v1120_v31 = vrot.slane %v1119_v30, 1 }
 0x150   : > { %v1121_v32 = vmin.f32 %v1119_v30, %v1120_v31 }
 0x152   : > { %vm1122_vm7 = vcmp.le.f32.partialorder %v2000_v56, %v1121_v32  ;;  %vm1123_vm8 = vcmp.le.f32.partialorder %v2014_v4, %v1121_v32  ;;  %vm1124_vm9 = vcmp.le.f32.partialorder %v2002_v57, %v1121_v32  ;;  %vm1126_vm10 = vcmp.le.f32.partialorder %v1998_v7, %v1121_v32 }
 0x153   : > { %vm1127_vm11 = vcmp.le.f32.partialorder %v2020_v9, %v1121_v32  ;;  %vm1125_vm12 = vcmp.le.f32.partialorder %v1994_v54, %v1121_v32  ;;  %vm1128_vm13 = vcmp.le.f32.partialorder %v2004_v60, %v1121_v32  ;;  %vm1129_vm14 = vcmp.le.f32.partialorder %v1996_v55, %v1121_v32 }
 0x154   : > { %vm1130_vm15 = vcmp.le.f32.partialorder %v2010_v63, %v1121_v32  ;;  %vm1131_vm0 = vcmp.le.f32.partialorder %v2022_v10, %v1121_v32  ;;  %vm1132_vm1 = vcmp.le.f32.partialorder %v2024_v11, %v1121_v32  ;;  %v1138_v33 = vsel %vm1122_vm7, 3e+38, %v2000_v56 }
 0x155   : > { %v1139_v34 = vsel %vm1123_vm8, 3e+38, %v2014_v4  ;;  %vm1133_vm5 = vcmp.le.f32.partialorder %v2012_v1, %v1121_v32  ;;  %v1140_v35 = vsel %vm1124_vm9, 3e+38, %v2002_v57  ;;  %v1142_v36 = vsel %vm1126_vm10, 3e+38, %v1998_v7 }
 0x156   : > { %v1143_v37 = vsel %vm1127_vm11, 3e+38, %v2020_v9  ;;  %v1141_v38 = vsel %vm1125_vm12, 3e+38, %v1994_v54  ;;  %v1144_v39 = vsel %vm1128_vm13, 3e+38, %v2004_v60  ;;  %v1154_v2 = vmin.f32 %v1138_v33, %v1142_v36 }
 0x157   : > { %v1145_v40 = vsel %vm1129_vm14, 3e+38, %v1996_v55  ;;  %vm1134_vm6 = vcmp.le.f32.partialorder %v2032_v16, %v1121_v32  ;;  %vm1135_vm7 = vcmp.le.f32.partialorder %v2034_v17, %v1121_v32  ;;  %vm1136_vm8 = vcmp.le.f32.partialorder %v2026_v12, %v1121_v32 }
 0x158   : > { %v1155_v41 = vmin.f32 %v1139_v34, %v1143_v37  ;;  %vm1137_vm9 = vcmp.le.f32.partialorder %v2018_v8, %v1121_v32  ;;  %v1146_v42 = vsel %vm1130_vm15, 3e+38, %v2010_v63  ;;  %v1147_v43 = vsel %vm1131_vm0, 3e+38, %v2022_v10 }
 0x159   : > { %v1156_v44 = vmin.f32 %v1140_v35, %v1144_v39  ;;  %v1148_v45 = vsel %vm1132_vm1, 3e+38, %v2024_v11  ;;  %v1157_v46 = vmin.f32 %v1141_v38, %v1145_v40  ;;  %v1158_v47 = vmin.f32 %v1154_v2, %v1146_v42 }
 0x15a   : > { %v1159_v48 = vmin.f32 %v1155_v41, %v1147_v43  ;;  %v1149_v3 = vsel %vm1133_vm5, 3e+38, %v2012_v1  ;;  %v1150_v49 = vsel %vm1134_vm6, 3e+38, %v2032_v16  ;;  %v1151_v50 = vsel %vm1135_vm7, 3e+38, %v2034_v17 }
 0x15b   : > { %v1160_v51 = vmin.f32 %v1156_v44, %v1148_v45  ;;  %v1152_v58 = vsel %vm1136_vm8, 3e+38, %v2026_v12  ;;  %v1161_v59 = vmin.f32 %v1157_v46, %v1149_v3  ;;  %v1162_v61 = vmin.f32 %v1158_v47, %v1150_v49 }
 0x15c   : > { %v1163_v62 = vmin.f32 %v1159_v48, %v1151_v50  ;;  %v1153_v5 = vsel %vm1137_vm9, 3e+38, %v2018_v8 }
 0x15d   : > { %v1164_v6 = vmin.f32 %v1160_v51, %v1152_v58  ;;  %v1165_v13 = vmin.f32 %v1161_v59, %v1153_v5 }
 0x15e   : > { %v1166_v14 = vmin.f32 %v1162_v61, %v1163_v62 }
 0x15f   : > { %v1167_v15 = vmin.f32 %v1164_v6, %v1165_v13 }
 0x161   : > { %v1168_v18 = vmin.f32 %v1166_v14, %v1167_v15 }
 0x163   : > { %v1169_v19 = vrot.slane %v1168_v18, 4 }
 0x165   : > { %v1170_v20 = vmin.f32 %v1168_v18, %v1169_v19 }
 0x167   : > { %v1171_v21 = vrot.slane %v1170_v20, 2 }
 0x169   : > { %v1172_v22 = vmin.f32 %v1170_v20, %v1171_v21 }
 0x16b   : > { %v1173_v23 = vrot.slane %v1172_v22, 1 }
 0x16d   : > { %v1174_v24 = vmin.f32 %v1172_v22, %v1173_v23 }
 0x16f   : > { %vm1175_vm6 = vcmp.le.f32.partialorder %v1138_v33, %v1174_v24  ;;  %vm1176_vm10 = vcmp.le.f32.partialorder %v1139_v34, %v1174_v24  ;;  %vm1177_vm11 = vcmp.le.f32.partialorder %v1140_v35, %v1174_v24  ;;  %vm1179_vm12 = vcmp.le.f32.partialorder %v1142_v36, %v1174_v24 }
 0x170   : > { %vm1180_vm13 = vcmp.le.f32.partialorder %v1143_v37, %v1174_v24  ;;  %vm1178_vm14 = vcmp.le.f32.partialorder %v1141_v38, %v1174_v24  ;;  %vm1181_vm15 = vcmp.le.f32.partialorder %v1144_v39, %v1174_v24  ;;  %vm1182_vm0 = vcmp.le.f32.partialorder %v1145_v40, %v1174_v24 }
 0x171   : > { %vm1183_vm1 = vcmp.le.f32.partialorder %v1146_v42, %v1174_v24  ;;  %vm1184_vm5 = vcmp.le.f32.partialorder %v1147_v43, %v1174_v24  ;;  %vm1185_vm7 = vcmp.le.f32.partialorder %v1148_v45, %v1174_v24  ;;  %v1191_v25 = vsel %vm1175_vm6, 3e+38, %v1138_v33 }
 0x172   : > { %v1192_v26 = vsel %vm1176_vm10, 3e+38, %v1139_v34  ;;  %vm1186_vm8 = vcmp.le.f32.partialorder %v1149_v3, %v1174_v24  ;;  %v1193_v27 = vsel %vm1177_vm11, 3e+38, %v1140_v35  ;;  %v1195_v28 = vsel %vm1179_vm12, 3e+38, %v1142_v36 }
 0x173   : > { %v1196_v29 = vsel %vm1180_vm13, 3e+38, %v1143_v37  ;;  %v1194_v30 = vsel %vm1178_vm14, 3e+38, %v1141_v38  ;;  %v1197_v31 = vsel %vm1181_vm15, 3e+38, %v1144_v39  ;;  %v1207_v2 = vmin.f32 %v1191_v25, %v1195_v28 }
 0x174   : > { %v1198_v32 = vsel %vm1182_vm0, 3e+38, %v1145_v40  ;;  %vm1187_vm9 = vcmp.le.f32.partialorder %v1150_v49, %v1174_v24  ;;  %vm1188_vm4 = vcmp.le.f32.partialorder %v1151_v50, %v1174_v24  ;;  %vm1189_vm3 = vcmp.le.f32.partialorder %v1152_v58, %v1174_v24 }
 0x175   : > { %v1208_v41 = vmin.f32 %v1192_v26, %v1196_v29  ;;  %vm1190_vm2 = vcmp.le.f32.partialorder %v1153_v5, %v1174_v24  ;;  %v1199_v44 = vsel %vm1183_vm1, 3e+38, %v1146_v42  ;;  %v1200_v46 = vsel %vm1184_vm5, 3e+38, %v1147_v43 }
 0x176   : > { %v1209_v47 = vmin.f32 %v1193_v27, %v1197_v31  ;;  %v1201_v33 = vsel %vm1185_vm7, 3e+38, %v1148_v45  ;;  %v1210_v34 = vmin.f32 %v1194_v30, %v1198_v32  ;;  %v1211_v35 = vmin.f32 %v1207_v2, %v1199_v44 }
 0x177   : > { %v1212_v36 = vmin.f32 %v1208_v41, %v1200_v46  ;;  %v1202_v37 = vsel %vm1186_vm8, 3e+38, %v1149_v3  ;;  %v1203_v38 = vsel %vm1187_vm9, 3e+38, %v1150_v49  ;;  %v1204_v39 = vsel %vm1188_vm4, 3e+38, %v1151_v50  ;;  %v1608_v50 = vpop.eup %1607 }
 0x178   : > { %v1213_v40 = vmin.f32 %v1209_v47, %v1201_v33  ;;  %v1205_v48 = vsel %vm1189_vm3, 3e+38, %v1152_v58  ;;  %v1214_v51 = vmin.f32 %v1210_v34, %v1202_v37  ;;  %v1215_v59 = vmin.f32 %v1211_v35, %v1203_v38  ;;  %v1610_v58 = vpop.eup %1609 }
 0x179   : > { %v1216_v61 = vmin.f32 %v1212_v36, %v1204_v39  ;;  %v1206_v62 = vsel %vm1190_vm2, 3e+38, %v1153_v5  ;;  %v1612_v5 = vpop.eup %1611  ;;  %vm2171_vm9 = vcmask 1042432   ;;  %v1354_v39 = vrot.slane %v1852_v52, 1 }
 0x17a   : > { %v1217_v42 = vmin.f32 %v1213_v40, %v1205_v48  ;;  %v1218_v6 = vmin.f32 %v1214_v51, %v1206_v62  ;;  %v1614_v20 = vpop.eup %1613  ;;  %v1351_v48 = vrot.slane %v1852_v52, 7  ;;  %v1364_v62 = vrot.slane %v1852_v52, 6 }
 0x17b   : > { %v1219_v43 = vmin.f32 %v1215_v59, %v1216_v61 }
 0x17c   : > { %v1220_v13 = vmin.f32 %v1217_v42, %v1218_v6 }
 0x17e   : > { %v1221_v14 = vmin.f32 %v1219_v43, %v1220_v13  ;;  %v1361_v43 = vrot.slane %v1852_v52, 2 }
 0x180   : > { %v1222_v45 = vrot.slane %v1221_v14, 4 }
 0x182   : > { %v1223_v15 = vmin.f32 %v1221_v14, %v1222_v45 }
 0x184   : > { %v1224_v18 = vrot.slane %v1223_v15, 2 }
 0x186   : > { %v1225_v19 = vmin.f32 %v1223_v15, %v1224_v18 }
 0x188   : > { %v1226_v3 = vrot.slane %v1225_v19, 1 }
 0x18a   : > { %v2092_v49 = vmin.f32 %v1225_v19, %v1226_v3 }
 0x18c   : > { %vm1259_vm2 = vcmp.le.f32.partialorder %v2018_v8, %v2092_v49  ;;  %vm1258_vm3 = vcmp.le.f32.partialorder %v2026_v12, %v2092_v49  ;;  %vm1257_vm4 = vcmp.le.f32.partialorder %v2034_v17, %v2092_v49  ;;  %vm1256_vm6 = vcmp.le.f32.partialorder %v2032_v16, %v2092_v49  ;;  %v1616_v8 = vpop.eup %1615 }
 0x18d   : > { %1574 = vmatpush.msk.msra.mxu1 %vm1259_vm2, %v1608_v50  ;;  %vm1255_vm10 = vcmp.le.f32.partialorder %v2012_v1, %v2092_v49  ;;  %v1618_v12 = vpop.eup %1617  ;;  %vm1254_vm11 = vcmp.le.f32.partialorder %v2024_v11, %v2092_v49  ;;  %vm1253_vm12 = vcmp.le.f32.partialorder %v2022_v10, %v2092_v49  ;;  %vm1252_vm13 = vcmp.le.f32.partialorder %v2010_v63, %v2092_v49 }
 0x18e   : > { %v1620_v17 = vpop.eup %1619  ;;  %vm1251_vm14 = vcmp.le.f32.partialorder %v1996_v55, %v2092_v49  ;;  %vm1250_vm15 = vcmp.le.f32.partialorder %v2004_v60, %v2092_v49  ;;  %vm1249_vm0 = vcmp.le.f32.partialorder %v2020_v9, %v2092_v49  ;;  %vm1248_vm1 = vcmp.le.f32.partialorder %v1998_v7, %v2092_v49  ;;  %v933_v9 = vld [vmem:[%s1849_s8 + $0x8] sm:$0xff] }
 0x18f   : > { %1575 = vmatpush.msk.msra.mxu1 %vm1258_vm3, %v1610_v58  ;;  %v1622_v16 = vpop.eup %1621  ;;  %vm1247_vm5 = vcmp.le.f32.partialorder %v1994_v54, %v2092_v49  ;;  %vm1246_vm7 = vcmp.le.f32.partialorder %v2002_v57, %v2092_v49  ;;  %vm1245_vm8 = vcmp.le.f32.partialorder %v2014_v4, %v2092_v49  ;;  %v1276_v7 = vsel %vm2171_vm9, %v933_v9, 1.0 }
 0x190   : > { %v1624_v1 = vpop.eup %1623  ;;  %vm1244_vm2 = vcmp.le.f32.partialorder %v2000_v56, %v2092_v49 }
 0x191   : > { %1576 = vmatpush.msk.msra.mxu1 %vm1257_vm4, %v1612_v5  ;;  %v1626_v11 = vpop.eup %1625 }
 0x192   : > { %v1628_v10 = vpop.eup %1627 }
 0x193   : > { %1577 = vmatpush.msk.msra.mxu1 %vm1256_vm6, %v1614_v20  ;;  %v1630_v63 = vpop.eup %1629 }
 0x194   : > { %v1632_v55 = vpop.eup %1631 }
 0x195   : > { %1578 = vmatpush.msk.msra.mxu1 %vm1255_vm10, %v1616_v8  ;;  %v1634_v60 = vpop.eup %1633 }
 0x196   : > { %v1636_v21 = vpop.eup %1635 }
 0x197   : > { %1579 = vmatpush.msk.msra.mxu1 %vm1254_vm11, %v1618_v12  ;;  %v1638_v22 = vpop.eup %1637 }
 0x199   : > { %1580 = vmatpush.msk.msra.mxu1 %vm1253_vm12, %v1620_v17 }
 0x19b   : > { %1581 = vmatpush.msk.msra.mxu1 %vm1252_vm13, %v1622_v16 }
 0x19d   : > { %1582 = vmatpush.msk.msra.mxu1 %vm1251_vm14, %v1624_v1  ;;  %vm1398_vm14 = vcmask 1040384  }
 0x19f   : > { %1583 = vmatpush.msk.msra.mxu1 %vm1250_vm15, %v1626_v11  ;;  %vm1400_vm15 = vcmask 1041408  }
 0x1a1   : > { %1584 = vmatpush.msk.msra.mxu1 %vm1249_vm0, %v1628_v10  ;;  %vm2172_vm0 = vmmov %vm2171_vm9  ;;  %vm2175_vm9 = vcmask 64512  }
 0x1a3   : > { %1585 = vmatpush.msk.msra.mxu1 %vm1248_vm1, %v1630_v63  ;;  %vm1405_vm1 = vcmask 1045504  }
 0x1a5   : > { %1586 = vmatpush.msk.msra.mxu1 %vm1247_vm5, %v1632_v55  ;;  %vm2173_vm5 = vcmask 1043456  }
 0x1a7   : > { %1587 = vmatpush.msk.msra.mxu1 %vm1246_vm7, %v1634_v60  ;;  %vm1407_vm7 = vcmask 1046528  }
 0x1a9   : > { %1588 = vmatpush.msk.msra.mxu1 %vm1245_vm8, %v1636_v21  ;;  %vm2174_vm8 = vcmask 1044480  }
 0x1ab   : > { %1589 = vmatpush.msk.msra.mxu1 %vm1244_vm2, %v1638_v22 }
 0x1ac   : > { %1293 = vmatmul.f32.vlgmr.msra.gmra.mxu1 %v1276_v7 }
 0x229   : > { %v1294_v54 = vpop.f32.mrf.mxu1 }
 0x22a   : > { %v1297_v23 = vperm.slane %v1294_v54, 3 }
 0x22c   : > { %1639 = vrcp.f32 %v1297_v23  ;;  %v1309_v26 = vand.u32 2147483648, %v1297_v23  ;;  %v1307_v28 = vand.u32 2147483647, %v1297_v23  ;;  %vm1303_vm4 = vweird.f32 %v1297_v23 }
 0x22e   : > { %v1310_v29 = vor.u32 1.1754944e-38, %v1309_v26  ;;  %vm1308_vm10 = vcmp.eq.f32.partialorder %v1307_v28, 8.507059e+37 }
 0x232   : > { %v1640_v24 = vpop.eup %1639 }
 0x233   : > { %v1299_v57 = vmul.f32 %v1640_v24, %v1297_v23  ;;  %vm1304_vm3 = vweird.f32 %v1640_v24 }
 0x234   : > { %vm1305_vm6 = vmor %vm1303_vm4, %vm1304_vm3 }
 0x235   : > { %v1300_v25 = vsub.f32 1.0, %v1299_v57  ;;  %v1409_v57 = vperm.slane %v1852_v52, 6 }
 0x237   : > { %v1301_v27 = vmul.f32 %v1640_v24, %v1300_v25 }
 0x239   : > { %v1302_v4 = vadd.f32 %v1640_v24, %v1301_v27 }
 0x23b   : > { %v1306_v30 = vsel %vm1305_vm6, %v1640_v24, %v1302_v4 }
 0x23c   : > { %v1311_v31 = vsel %vm1308_vm10, %v1310_v29, %v1306_v30 }
 0x23d   : > { %v1312_v56 = vmul.f32 %v1311_v31, %v1294_v54 }
 0x23f   : > { %v1313_v32 = vmul.f32 %v1312_v56, %v1312_v56 }
 0x241   : > { %v1315_v2 = vrot.slane %v1313_v32, 1  ;;  %v1318_v44 = vrot.slane %v1313_v32, 2 }
 0x243   : > { %v1317_v41 = vadd.f32 %v1315_v2, %v1313_v32 }
 0x245   : > { %v1320_v46 = vadd.f32 %v1318_v44, %v1317_v41 }
 0x247   : > { %v1321_v47 = vadd.f32 1e-12, %v1320_v46 }
 0x249   : > { %1641 = vrsqrt.f32 %v1321_v47  ;;  %vm1328_vm12 = vweird.f32 %v1321_v47 }
 0x24f   : > { %v1642_v33 = vpop.eup %1641 }
 0x250   : > { %v1323_v34 = vmul.f32 %v1642_v33, %v1321_v47  ;;  %vm1329_vm11 = vweird.f32 %v1642_v33 }
 0x251   : > { %vm1330_vm13 = vmor %vm1328_vm12, %vm1329_vm11 }
 0x252   : > { %v1324_v35 = vmul.f32 %v1642_v33, %v1323_v34 }
 0x254   : > { %v1325_v36 = vmul.f32 0.5, %v1324_v35 }
 0x256   : > { %v1326_v37 = vsub.f32 1.5, %v1325_v36 }
 0x258   : > { %v1327_v38 = vmul.f32 %v1642_v33, %v1326_v37 }
 0x25a   : > { %v1331_v40 = vsel %vm1330_vm13, %v1642_v33, %v1327_v38 }
 0x25b   : > { %v1332_v51 = vmul.f32 %v1331_v40, %v1312_v56  ;;  %v1334_v59 = vrot.slane %v1331_v40, 7  ;;  %v1337_v61 = vrot.slane %v1331_v40, 6 }
 0x25d   : > { %v1336_v42 = vmul.f32 %v1334_v59, %v1312_v56  ;;  %v1339_v6 = vmul.f32 %v1337_v61, %v1312_v56  ;;  %v1372_v13 = vmul.f32 %v1354_v39, %v1332_v51  ;;  %v1363_v58 = vmul.f32 %v1361_v43, %v1332_v51 }
 0x25e   : > { %v1340_v20 = vmul.f32 %v1332_v51, %v1855_v53  ;;  %v1387_v9 = vrot.slane %v1332_v51, 5 }
 0x25f   : > { %v1356_v14 = vmul.f32 %v1354_v39, %v1336_v42  ;;  %v1366_v45 = vmul.f32 %v1364_v62, %v1339_v6  ;;  %v1371_v15 = vmul.f32 %v1351_v48, %v1336_v42  ;;  %v1374_v18 = vrot.slane %v1372_v13, 7 }
 0x260   : > { %v1341_v19 = vmul.f32 %v1336_v42, %v1855_v53  ;;  %v1346_v3 = vmul.f32 %v1339_v6, %v1855_v53  ;;  %v1353_v49 = vmul.f32 %v1351_v48, %v1339_v6  ;;  %v1390_v7 = vrot.slane %v1336_v42, 5 }
 0x261   : > { %v1358_v50 = vrot.slane %v1356_v14, 7  ;;  %v1368_v5 = vrot.slane %v1366_v45, 2  ;;  %v1376_v12 = vsub.f32 %v1371_v15, %v1374_v18  ;;  %v1393_v54 = vrot.slane %v1339_v6, 5 }
 0x262   : > { %v1343_v8 = vrot.slane %v1341_v19, 1  ;;  %v1348_v11 = vrot.slane %v1346_v3, 2 }
 0x263   : > { %v1360_v17 = vsub.f32 %v1353_v49, %v1358_v50  ;;  %v1370_v16 = vsub.f32 %v1363_v58, %v1368_v5  ;;  %v1384_v60 = vrot.slane %v1376_v12, 7 }
 0x264   : > { %v1345_v1 = vadd.f32 %v1343_v8, %v1340_v20 }
 0x265   : > { %v1378_v10 = vrot.slane %v1360_v17, 2  ;;  %v1381_v63 = vrot.slane %v1370_v16, 7 }
 0x266   : > { %v1350_v55 = vadd.f32 %v1348_v11, %v1345_v1 }
 0x267   : > { %v1399_v21 = vsel %vm1398_vm14, %v1378_v10, %v1381_v63 }
 0x268   : > { %v1401_v22 = vsel %vm1400_vm15, %v1399_v21, %v1384_v60  ;;  %v1396_v23 = vrot.slane %v1350_v55, 2 }
 0x269   : > { %v1402_v53 = vsel %vm2172_vm0, %v1401_v22, %v1387_v9 }
 0x26a   : > { %v1403_v24 = vsel %vm2173_vm5, %v1402_v53, %v1390_v7 }
 0x26b   : > { %v1404_v25 = vsel %vm2174_vm8, %v1403_v24, %v1393_v54 }
 0x26c   : > { %v1406_v26 = vsel %vm1405_vm1, %v1404_v25, %v1396_v23 }
 0x26d   : > { %v1408_v27 = vsel %vm1407_vm7, %v1406_v26, 0.0  ;;  %1590 = vmatpush.xpose.msk.msrb.mxu2 %vm1407_vm7, %v1406_v26 }
 0x26e   : > { %v1410_v28 = vmul.f32 %v1409_v57, %v1408_v27 }
 0x270   : > { %1427 = vmatmul.f32.vlgmr.msrb.gmra.mxu2 %v1410_v28 }
 0x2f3   : > { %v1428_v4 = vpop.f32.mrf.mxu2 }
 0x2f4   : > { %1431 = vst.msk [vmem:[%s293_s19] sm:$0xff] %vm2175_vm9, %v1428_v4 }
 0x2f5 PF: > { %s18_s23 = sadd.s32 1, %s1649_s23  }
 0x2f6   : > { %p15_p4 = scmp.ge.s32.totalorder %s18_s23, 4  }
 0x2f8   :  { %17 = sbr.rel (!%p15_p4) target bundleno = 2 (0x2), region = 136 }

</bundles_post_ra>
